<compile_context>
chip_gen: v7x
topology: tpu7x:2x2x1
jax: 0.10.0
libtpu: 0.0.40
codegen_flags: <defaults>
</compile_context>

<pallas_src>
import functools

import numpy as np
import jax
import jax.numpy as jnp
from jax.experimental import pallas as pl
from jax.experimental.pallas import tpu as pltpu


# ----------------------------------------------------------------------------
# Wavelet filters (deterministic "parameters"). db8 reconstruction low-pass
# filter in the PyWavelets convention (rec_lo); all other filters derive from
# it exactly as pywt / pytorch_wavelets do.
# ----------------------------------------------------------------------------
_DB8_REC_LO = np.array(
    [
        0.05441584224308161, 0.3128715909144659, 0.6756307362980128,
        0.5853546836548691, -0.015829105256023893, -0.2840155429624281,
        0.00047248457399797254, 0.128747426620186, -0.01736930100202211,
        -0.04408825393106472, 0.013981027917015516, 0.008746094047015655,
        -0.00487035299301066, -0.0003917403729959771, 0.0006754494059985568,
        -0.00011747678400228192,
    ],
    dtype=np.float64,
)


def _wavelet_filters(wv="db8"):
    assert wv == "db8", "only db8 (the module default) is provided in-script"
    rec_lo = _DB8_REC_LO
    L = len(rec_lo)
    # quadrature mirror filter (pywt): rec_hi[k] = (-1)^k * rec_lo[L-1-k]
    rec_hi = np.array([((-1.0) ** k) * rec_lo[L - 1 - k] for k in range(L)])
    return rec_lo, rec_hi


# ----------------------------------------------------------------------------
# Dense separable operators replicating pytorch_wavelets lowlevel.afb1d /
# sfb1d with mode='zero' (the DWTForward/DWTInverse defaults).
# ----------------------------------------------------------------------------
def _analysis_matrix(N, rec_lo, rec_hi):
    """afb1d (stride-2 correlation, zero padding) as a (2*out, N) matrix.

    Rows [0:out] produce low-pass coefficients, rows [out:2*out] high-pass.
    """
    L = len(rec_lo)
    out = (N + L - 1) // 2            # pywt.dwt_coeff_len(N, L, 'zero')
    p = 2 * (out - 1) - N + L         # total zero padding
    pad = p // 2
    A = np.zeros((2 * out, N), dtype=np.float64)
    for o in range(out):
        for t in range(L):
            idx = 2 * o + t - pad
            if 0 <= idx < N:
                A[o, idx] += rec_lo[t]
                A[out + o, idx] += rec_hi[t]
    return A, out


def _synthesis_matrix(m, rec_lo, rec_hi):
    """sfb1d (conv_transpose, stride 2, padding L-2) as a (n, 2*m) matrix.

    Columns [0:m] multiply low-pass coefficients, columns [m:2*m] high-pass.
    """
    L = len(rec_lo)
    n = 2 * m + 2 - L
    S = np.zeros((n, 2 * m), dtype=np.float64)
    for j in range(n):
        for i in range(m):
            k = j + (L - 2) - 2 * i
            if 0 <= k < L:
                S[j, i] += rec_lo[k]
                S[j, m + i] += rec_hi[k]
    return S, n


# ----------------------------------------------------------------------------
# Fused operator construction (numpy setup glue).
#
# Within one grid step, `bblk` images are laid out side-by-side along the lane
# axis: X = [x_0 | x_1 | ... | x_{bblk-1}]  of shape (H, bblk*W).
# Row-pass operators stay plain; column-pass operators become block-diagonal
# (kron(I_bblk, .)) so everything is a single wide 2-D matmul.
#
# The inverse's "substitute the deeper reconstruction into the LL quadrant"
# is rewritten linearly:
#   rec_l = S_lo_h @ trim(rec_{l+1}) @ S_lo_w^T  +  S_h @ D_l @ S_w^T
# where D_l is the thresholded coefficient block with the LL quadrant zeroed,
# and the trim is folded into zero-padded S_lo operators (PLh / PLwT).
# ----------------------------------------------------------------------------
_MATS_PER_LEVEL = 8


def _build_fused_operators(Hp, Wp, level, bblk, rec_lo, rec_hi):
    Ah_l, Aw_l, Sh_l, Sw_l = [], [], [], []
    ho_l, wo_l, nh_l, nw_l = [], [], [], []
    h, w = Hp, Wp
    for _ in range(level):
        Ah, ho = _analysis_matrix(h, rec_lo, rec_hi)
        Aw, wo = _analysis_matrix(w, rec_lo, rec_hi)
        Sh, nh = _synthesis_matrix(ho, rec_lo, rec_hi)
        Sw, nw = _synthesis_matrix(wo, rec_lo, rec_hi)
        Ah_l.append(Ah); Aw_l.append(Aw); Sh_l.append(Sh); Sw_l.append(Sw)
        ho_l.append(ho); wo_l.append(wo); nh_l.append(nh); nw_l.append(nw)
        h, w = ho, wo

    def bd(M):  # block-diagonal over the bblk lane-concatenated images
        return np.kron(np.eye(bblk, dtype=np.float64), M)

    mats = []
    for l in range(level):
        ho, wo, nh, nw = ho_l[l], wo_l[l], nh_l[l], nw_l[l]
        Ah, Aw, Sh, Sw = Ah_l[l], Aw_l[l], Sh_l[l], Sw_l[l]

        # ---- forward ----
        A_h = Ah                                   # (2ho, H_l)
        BD_AwT = bd(Aw.T)                          # (B*W_l, B*2wo)
        BD_AloT = bd(Aw[:wo, :].T)                 # (B*W_l, B*wo)  (low-pass only)
        notll = np.ones((2 * ho, bblk * 2 * wo), dtype=np.float64)
        for b in range(bblk):                      # zero the LL strip of each image
            notll[:ho, b * 2 * wo: b * 2 * wo + wo] = 0.0

        # ---- inverse ----
        S_h = Sh                                   # (nh, 2ho)
        BD_SwT = bd(Sw.T)                          # (B*2wo, B*nw)
        if l == level - 1:                         # deepest: rec input is the final LL
            rin_h, rin_w = ho, wo
        else:                                      # rec input is level l+1 reconstruction
            rin_h, rin_w = nh_l[l + 1], nw_l[l + 1]
        PLh = np.zeros((nh, rin_h), dtype=np.float64)
        PLh[:, :ho] = Sh[:, :ho]                   # S_lo_h with the trim folded in
        PwT = np.zeros((rin_w, nw), dtype=np.float64)
        PwT[:wo, :] = Sw[:, :wo].T                 # S_lo_w^T with the trim folded in
        BD_PLwT = bd(PwT)

        mats.extend([A_h, BD_AwT, BD_AloT, notll, S_h, BD_SwT, PLh, BD_PLwT])

    out_h, out_w = nh_l[0], nw_l[0]                # == (Hp, Wp) for even sizes / db8
    return [jnp.asarray(m, jnp.float32) for m in mats], (out_h, out_w)


# ----------------------------------------------------------------------------
# The fused Pallas kernel: all forward levels + thresholding + all inverse
# levels for one group of lane-concatenated images.
# ----------------------------------------------------------------------------
def _fused_wavelet_kernel(ths_ref, x_ref, *refs, level):
    out_ref = refs[-1]
    m = refs[:-1]
    P = _MATS_PER_LEVEL

    ths = ths_ref[0]
    ll = x_ref[0]                                      # (Hp, bblk*Wp)
    details = []

    # ---- forward DWT levels (details soft-thresholded, LL zeroed) ----
    for l in range(level):
        A_h = m[P * l + 0][...]
        BD_AwT = m[P * l + 1][...]
        BD_AloT = m[P * l + 2][...]
        notll = m[P * l + 3][...]
        ho = A_h.shape[0] // 2

        t = jnp.dot(A_h, ll, preferred_element_type=jnp.float32)        # (2ho, B*W_l)
        y = jnp.dot(t, BD_AwT, preferred_element_type=jnp.float32)      # (2ho, B*2wo)
        soft = jnp.maximum(y - ths, 0.0) + jnp.minimum(y + ths, 0.0)    # prox_l1
        details.append(soft * notll)                                    # LL strips -> 0
        # next-level LL = low-pass rows of t times block-diag low-pass cols
        ll = jnp.dot(t[:ho, :], BD_AloT, preferred_element_type=jnp.float32)

    # ---- inverse DWT levels ----
    rec = ll                                           # deepest LL
    for l in range(level - 1, -1, -1):
        S_h = m[P * l + 4][...]
        BD_SwT = m[P * l + 5][...]
        PLh = m[P * l + 6][...]
        BD_PLwT = m[P * l + 7][...]

        low = jnp.dot(jnp.dot(PLh, rec, preferred_element_type=jnp.float32),
                      BD_PLwT, preferred_element_type=jnp.float32)
        det = jnp.dot(jnp.dot(S_h, details[l], preferred_element_type=jnp.float32),
                      BD_SwT, preferred_element_type=jnp.float32)
        rec = low + det

    out_ref[0] = rec


def _fused_pallas_call(zcat, ths_arr, mats, level, out_h, out_wcat):
    G, Hp, Wcat = zcat.shape

    in_specs = [
        pl.BlockSpec(memory_space=pltpu.MemorySpace.SMEM),          # ths scalar
        pl.BlockSpec((1, Hp, Wcat), lambda g: (g, 0, 0)),           # image group
    ]
    for M in mats:                                                  # constant operators
        shape = tuple(int(d) for d in M.shape)
        in_specs.append(pl.BlockSpec(shape, lambda g: (0, 0)))

    # VMEM budget: double-buffered image/out blocks + resident operator
    # matrices + headroom for the in-kernel coefficient pyramid.  Capped at
    # 64 MiB so the request is valid on v5e/v6e (128 MiB) and v7x (64 MiB).
    const_bytes = sum(int(np.prod(M.shape)) for M in mats) * 4
    block_bytes = Hp * Wcat * 4
    vmem_needed = 12 * block_bytes + 2 * const_bytes
    vmem_limit = int(min(64 * 2 ** 20, max(32 * 2 ** 20, 2 * vmem_needed)))

    return pl.pallas_call(
        functools.partial(_fused_wavelet_kernel, level=level),
        out_shape=jax.ShapeDtypeStruct((G, out_h, out_wcat), jnp.float32),
        grid=(G,),
        in_specs=in_specs,
        out_specs=pl.BlockSpec((1, out_h, out_wcat), lambda g: (g, 0, 0)),
        compiler_params=pltpu.CompilerParams(
            dimension_semantics=("parallel",),
            vmem_limit_bytes=vmem_limit,
        ),
    )(ths_arr, zcat, *mats)


# ----------------------------------------------------------------------------
# Pure-JAX reference of the same operator pipeline (verification only).
# Uses the straightforward per-level einsum + LL-substitution formulation.
# ----------------------------------------------------------------------------
def _reference_pipeline(z, ths, level, rec_lo, rec_hi):
    BC, Hp, Wp = z.shape
    hi = jax.lax.Precision.HIGHEST
    fwd, inv, sizes = [], [], [(Hp, Wp)]
    h, w = Hp, Wp
    for _ in range(level):
        Ah, ho = _analysis_matrix(h, rec_lo, rec_hi)
        Aw, wo = _analysis_matrix(w, rec_lo, rec_hi)
        Sh, _ = _synthesis_matrix(ho, rec_lo, rec_hi)
        Sw, _ = _synthesis_matrix(wo, rec_lo, rec_hi)
        fwd.append((jnp.asarray(Ah, jnp.float32), jnp.asarray(Aw.T, jnp.float32), ho, wo))
        inv.append((jnp.asarray(Sh, jnp.float32), jnp.asarray(Sw.T, jnp.float32)))
        sizes.append((ho, wo))
        h, w = ho, wo

    coeffs, ll = [], z
    for l in range(level):
        Ah, AwT, ho, wo = fwd[l]
        y = jnp.einsum("ij,bjk,kl->bil", Ah, ll, AwT, precision=hi)
        soft = jnp.maximum(y - ths, 0.0) + jnp.minimum(y + ths, 0.0)
        row = jnp.arange(y.shape[1])[:, None]
        col = jnp.arange(y.shape[2])[None, :]
        is_ll = (row < ho) & (col < wo)
        Y = jnp.where(is_ll[None], y, soft)
        coeffs.append(Y)
        ll = Y[:, :ho, :wo]

    rec = ll
    for l in range(level - 1, -1, -1):
        ho, wo = sizes[l + 1]
        Sh, SwT = inv[l]
        Y = coeffs[l].at[:, :ho, :wo].set(rec[:, :ho, :wo])
        rec = jnp.einsum("ij,bjk,kl->bil", Sh, Y, SwT, precision=hi)
    return rec[:, :Hp, :Wp]


# ----------------------------------------------------------------------------
# WaveletPrior.forward
# ----------------------------------------------------------------------------
def wavelet_prior_forward(x, ths=0.0, level=3, wv="db8", use_pallas=True):
    """Equivalent of WaveletPrior(level, wv).forward(x, ths) for scalar ths.

    x: (N, C, H, W) float array (NCHW, PyTorch convention).
    """
    # TODO(synk): per-level / per-channel tensor `ths` broadcasting is not
    # implemented; only a scalar threshold (the module default) is supported.
    rec_lo, rec_hi = _wavelet_filters(wv)
    ths_f = float(ths)

    B, C, Hin, Win = x.shape
    pb, pr = Hin % 2, Win % 2
    xp = x
    if pb or pr:  # ReplicationPad2d((0, pr, 0, pb))
        xp = jnp.pad(x, ((0, 0), (0, 0), (0, pb), (0, pr)), mode="edge")
    Hp, Wp = xp.shape[-2], xp.shape[-1]
    BC = B * C
    z = xp.reshape(BC, Hp, Wp).astype(jnp.float32)

    if not use_pallas:
        rec = _reference_pipeline(z, ths_f, level, rec_lo, rec_hi)
    else:
        # How many images to concatenate along the lane axis per grid step:
        # target ~128 lanes for dense stores / MXU fill, but keep the grid
        # >= 2 steps when the batch allows it (v7x has 2 TensorCores/chip).
        if Wp >= 128:
            bblk = 1
        else:
            bblk = max(1, 128 // Wp)
        bblk = min(bblk, BC)
        if BC >= 2:
            bblk = min(bblk, max(1, (BC + 1) // 2))
        G = -(-BC // bblk)
        BCp = G * bblk
        zp = z if BCp == BC else jnp.pad(z, ((0, BCp - BC), (0, 0), (0, 0)))

        Wcat = bblk * Wp
        zcat = jnp.transpose(zp.reshape(G, bblk, Hp, Wp), (0, 2, 1, 3)).reshape(G, Hp, Wcat)

        mats, (oh, ow) = _build_fused_operators(Hp, Wp, level, bblk, rec_lo, rec_hi)
        ths_arr = jnp.asarray([ths_f], dtype=jnp.float32)

        out = _fused_pallas_call(zcat, ths_arr, mats, level, oh, bblk * ow)
        out = jnp.transpose(out.reshape(G, oh, bblk, ow), (0, 2, 1, 3)).reshape(BCp, oh, ow)
        rec = out[:BC, :Hp, :Wp]

    rec = rec.reshape(B, C, Hp, Wp)[..., :Hin, :Win]
    return rec.astype(x.dtype)


# ----------------------------------------------------------------------------
if __name__ == "__main__":
    key = jax.random.PRNGKey(0)
    x = jax.random.normal(key, (2, 4, 16, 16), dtype=jnp.float32)

    # Pallas implementation (level=3, db8 = module defaults), ths=0.1.
    y = jax.block_until_ready(wavelet_prior_forward(x, ths=0.1, level=3))
    assert y.shape == x.shape and y.dtype == x.dtype

    # Check against the pure-JAX reference of the same operator pipeline.
    y_ref = jax.block_until_ready(
        wavelet_prior_forward(x, ths=0.1, level=3, use_pallas=False))
    err = float(jnp.max(jnp.abs(y - y_ref)))
    assert err < 3e-3, f"pallas vs reference mismatch: {err}"

    # With ths=0 the prox is identity -> perfect reconstruction of the input.
    y0 = jax.block_until_ready(wavelet_prior_forward(x, ths=0.0, level=3))
    rec_err = float(jnp.max(jnp.abs(y0 - x)))
    assert rec_err < 5e-3, f"reconstruction error too large: {rec_err}"

    # Odd spatial size + channel count not divisible by the lane-batch:
    # exercises the replication pad, the zero-image padding and the trims.
    x2 = jax.random.normal(jax.random.PRNGKey(1), (1, 3, 17, 10), dtype=jnp.float32)
    y2 = jax.block_until_ready(wavelet_prior_forward(x2, ths=0.05, level=3))
    y2_ref = jax.block_until_ready(
        wavelet_prior_forward(x2, ths=0.05, level=3, use_pallas=False))
    err2 = float(jnp.max(jnp.abs(y2 - y2_ref)))
    assert err2 < 3e-3, f"odd-size pallas vs reference mismatch: {err2}"

    print("KERNEL_OK")
</pallas_src>

<mosaic_0001>
module attributes {stable_mosaic.version = 11 : i64} {
  func.func @_fused_wavelet_kernel(%arg0: i32, %arg1: memref<1xf32, #tpu.memory_space<smem>>, %arg2: memref<1x16x64xf32, #tpu.memory_space<vmem>>, %arg3: memref<30x16xf32, #tpu.memory_space<vmem>>, %arg4: memref<64x120xf32, #tpu.memory_space<vmem>>, %arg5: memref<64x60xf32, #tpu.memory_space<vmem>>, %arg6: memref<30x120xf32, #tpu.memory_space<vmem>>, %arg7: memref<16x30xf32, #tpu.memory_space<vmem>>, %arg8: memref<120x64xf32, #tpu.memory_space<vmem>>, %arg9: memref<16x16xf32, #tpu.memory_space<vmem>>, %arg10: memref<64x64xf32, #tpu.memory_space<vmem>>, %arg11: memref<30x15xf32, #tpu.memory_space<vmem>>, %arg12: memref<60x120xf32, #tpu.memory_space<vmem>>, %arg13: memref<60x60xf32, #tpu.memory_space<vmem>>, %arg14: memref<30x120xf32, #tpu.memory_space<vmem>>, %arg15: memref<16x30xf32, #tpu.memory_space<vmem>>, %arg16: memref<120x64xf32, #tpu.memory_space<vmem>>, %arg17: memref<16x16xf32, #tpu.memory_space<vmem>>, %arg18: memref<64x64xf32, #tpu.memory_space<vmem>>, %arg19: memref<30x15xf32, #tpu.memory_space<vmem>>, %arg20: memref<60x120xf32, #tpu.memory_space<vmem>>, %arg21: memref<60x60xf32, #tpu.memory_space<vmem>>, %arg22: memref<30x120xf32, #tpu.memory_space<vmem>>, %arg23: memref<16x30xf32, #tpu.memory_space<vmem>>, %arg24: memref<120x64xf32, #tpu.memory_space<vmem>>, %arg25: memref<16x15xf32, #tpu.memory_space<vmem>>, %arg26: memref<60x64xf32, #tpu.memory_space<vmem>>, %arg27: memref<1x16x64xf32, #tpu.memory_space<vmem>>) attributes {dimension_semantics = [#tpu.dimension_semantics<parallel>], iteration_bounds = array<i64: 2>, scalar_prefetch = 0 : i64, scratch_operands = 0 : i64, tpu.core_type = #tpu.core_type<tc>, window_params = [{transform_indices = @transform_0, window_bounds = array<i64: 1>}, {transform_indices = @transform_1, window_bounds = array<i64: 1, 16, 64>}, {pipeline_mode = #tpu.pipeline_mode<synchronous>, transform_indices = @transform_2, window_bounds = array<i64: 30, 16>}, {pipeline_mode = #tpu.pipeline_mode<synchronous>, transform_indices = @transform_3, window_bounds = array<i64: 64, 120>}, {pipeline_mode = #tpu.pipeline_mode<synchronous>, transform_indices = @transform_4, window_bounds = array<i64: 64, 60>}, {pipeline_mode = #tpu.pipeline_mode<synchronous>, transform_indices = @transform_5, window_bounds = array<i64: 30, 120>}, {pipeline_mode = #tpu.pipeline_mode<synchronous>, transform_indices = @transform_6, window_bounds = array<i64: 16, 30>}, {pipeline_mode = #tpu.pipeline_mode<synchronous>, transform_indices = @transform_7, window_bounds = array<i64: 120, 64>}, {pipeline_mode = #tpu.pipeline_mode<synchronous>, transform_indices = @transform_8, window_bounds = array<i64: 16, 16>}, {pipeline_mode = #tpu.pipeline_mode<synchronous>, transform_indices = @transform_9, window_bounds = array<i64: 64, 64>}, {pipeline_mode = #tpu.pipeline_mode<synchronous>, transform_indices = @transform_10, window_bounds = array<i64: 30, 15>}, {pipeline_mode = #tpu.pipeline_mode<synchronous>, transform_indices = @transform_11, window_bounds = array<i64: 60, 120>}, {pipeline_mode = #tpu.pipeline_mode<synchronous>, transform_indices = @transform_12, window_bounds = array<i64: 60, 60>}, {pipeline_mode = #tpu.pipeline_mode<synchronous>, transform_indices = @transform_13, window_bounds = array<i64: 30, 120>}, {pipeline_mode = #tpu.pipeline_mode<synchronous>, transform_indices = @transform_14, window_bounds = array<i64: 16, 30>}, {pipeline_mode = #tpu.pipeline_mode<synchronous>, transform_indices = @transform_15, window_bounds = array<i64: 120, 64>}, {pipeline_mode = #tpu.pipeline_mode<synchronous>, transform_indices = @transform_16, window_bounds = array<i64: 16, 16>}, {pipeline_mode = #tpu.pipeline_mode<synchronous>, transform_indices = @transform_17, window_bounds = array<i64: 64, 64>}, {pipeline_mode = #tpu.pipeline_mode<synchronous>, transform_indices = @transform_18, window_bounds = array<i64: 30, 15>}, {pipeline_mode = #tpu.pipeline_mode<synchronous>, transform_indices = @transform_19, window_bounds = array<i64: 60, 120>}, {pipeline_mode = #tpu.pipeline_mode<synchronous>, transform_indices = @transform_20, window_bounds = array<i64: 60, 60>}, {pipeline_mode = #tpu.pipeline_mode<synchronous>, transform_indices = @transform_21, window_bounds = array<i64: 30, 120>}, {pipeline_mode = #tpu.pipeline_mode<synchronous>, transform_indices = @transform_22, window_bounds = array<i64: 16, 30>}, {pipeline_mode = #tpu.pipeline_mode<synchronous>, transform_indices = @transform_23, window_bounds = array<i64: 120, 64>}, {pipeline_mode = #tpu.pipeline_mode<synchronous>, transform_indices = @transform_24, window_bounds = array<i64: 16, 15>}, {pipeline_mode = #tpu.pipeline_mode<synchronous>, transform_indices = @transform_25, window_bounds = array<i64: 60, 64>}, {transform_indices = @transform_26, window_bounds = array<i64: 1, 16, 64>}]} {
    %c0 = arith.constant 0 : index
    %0 = memref.load %arg1[%c0] : memref<1xf32, #tpu.memory_space<smem>>
    %c0_0 = arith.constant 0 : index
    %c0_1 = arith.constant 0 : index
    %c0_2 = arith.constant 0 : index
    %1 = vector.load %arg2[%c0_0, %c0_1, %c0_2] : memref<1x16x64xf32, #tpu.memory_space<vmem>>, vector<1x16x64xf32>
    %2 = vector.shape_cast %1 : vector<1x16x64xf32> to vector<16x64xf32>
    %c0_3 = arith.constant 0 : index
    %c0_4 = arith.constant 0 : index
    %3 = vector.load %arg3[%c0_3, %c0_4] : memref<30x16xf32, #tpu.memory_space<vmem>>, vector<30x16xf32>
    %c0_5 = arith.constant 0 : index
    %c0_6 = arith.constant 0 : index
    %4 = vector.load %arg4[%c0_5, %c0_6] : memref<64x120xf32, #tpu.memory_space<vmem>>, vector<64x120xf32>
    %c0_7 = arith.constant 0 : index
    %c0_8 = arith.constant 0 : index
    %5 = vector.load %arg5[%c0_7, %c0_8] : memref<64x60xf32, #tpu.memory_space<vmem>>, vector<64x60xf32>
    %c0_9 = arith.constant 0 : index
    %c0_10 = arith.constant 0 : index
    %6 = vector.load %arg6[%c0_9, %c0_10] : memref<30x120xf32, #tpu.memory_space<vmem>>, vector<30x120xf32>
    %cst = arith.constant dense<0.000000e+00> : vector<30x64xf32>
    %7 = tpu.matmul %3, %2, %cst {dimension_numbers = #tpu.dot_dimension_numbers<[1], [0], [0], [1], [0, 0, 1, 1], [], []>} : vector<30x16xf32>, vector<16x64xf32>, vector<30x64xf32> -> vector<30x64xf32>
    %cst_11 = arith.constant dense<0.000000e+00> : vector<30x120xf32>
    %8 = tpu.matmul %7, %4, %cst_11 {dimension_numbers = #tpu.dot_dimension_numbers<[1], [0], [0], [1], [0, 0, 1, 1], [], []>} : vector<30x64xf32>, vector<64x120xf32>, vector<30x120xf32> -> vector<30x120xf32>
    %9 = vector.broadcast %0 : f32 to vector<30x120xf32>
    %10 = arith.subf %8, %9 : vector<30x120xf32>
    %cst_12 = arith.constant 0.000000e+00 : f32
    %11 = vector.broadcast %cst_12 : f32 to vector<30x120xf32>
    %12 = arith.maximumf %10, %11 : vector<30x120xf32>
    %13 = vector.broadcast %0 : f32 to vector<30x120xf32>
    %14 = arith.addf %8, %13 : vector<30x120xf32>
    %cst_13 = arith.constant 0.000000e+00 : f32
    %15 = vector.broadcast %cst_13 : f32 to vector<30x120xf32>
    %16 = arith.minimumf %14, %15 : vector<30x120xf32>
    %17 = arith.addf %12, %16 : vector<30x120xf32>
    %18 = arith.mulf %17, %6 : vector<30x120xf32>
    %19 = vector.extract_strided_slice %7 {offsets = [0, 0], sizes = [15, 64], strides = [1, 1]} : vector<30x64xf32> to vector<15x64xf32>
    %cst_14 = arith.constant dense<0.000000e+00> : vector<15x60xf32>
    %20 = tpu.matmul %19, %5, %cst_14 {dimension_numbers = #tpu.dot_dimension_numbers<[1], [0], [0], [1], [0, 0, 1, 1], [], []>} : vector<15x64xf32>, vector<64x60xf32>, vector<15x60xf32> -> vector<15x60xf32>
    %c0_15 = arith.constant 0 : index
    %c0_16 = arith.constant 0 : index
    %21 = vector.load %arg11[%c0_15, %c0_16] : memref<30x15xf32, #tpu.memory_space<vmem>>, vector<30x15xf32>
    %c0_17 = arith.constant 0 : index
    %c0_18 = arith.constant 0 : index
    %22 = vector.load %arg12[%c0_17, %c0_18] : memref<60x120xf32, #tpu.memory_space<vmem>>, vector<60x120xf32>
    %c0_19 = arith.constant 0 : index
    %c0_20 = arith.constant 0 : index
    %23 = vector.load %arg13[%c0_19, %c0_20] : memref<60x60xf32, #tpu.memory_space<vmem>>, vector<60x60xf32>
    %c0_21 = arith.constant 0 : index
    %c0_22 = arith.constant 0 : index
    %24 = vector.load %arg14[%c0_21, %c0_22] : memref<30x120xf32, #tpu.memory_space<vmem>>, vector<30x120xf32>
    %cst_23 = arith.constant dense<0.000000e+00> : vector<30x60xf32>
    %25 = tpu.matmul %21, %20, %cst_23 {dimension_numbers = #tpu.dot_dimension_numbers<[1], [0], [0], [1], [0, 0, 1, 1], [], []>} : vector<30x15xf32>, vector<15x60xf32>, vector<30x60xf32> -> vector<30x60xf32>
    %cst_24 = arith.constant dense<0.000000e+00> : vector<30x120xf32>
    %26 = tpu.matmul %25, %22, %cst_24 {dimension_numbers = #tpu.dot_dimension_numbers<[1], [0], [0], [1], [0, 0, 1, 1], [], []>} : vector<30x60xf32>, vector<60x120xf32>, vector<30x120xf32> -> vector<30x120xf32>
    %27 = vector.broadcast %0 : f32 to vector<30x120xf32>
    %28 = arith.subf %26, %27 : vector<30x120xf32>
    %cst_25 = arith.constant 0.000000e+00 : f32
    %29 = vector.broadcast %cst_25 : f32 to vector<30x120xf32>
    %30 = arith.maximumf %28, %29 : vector<30x120xf32>
    %31 = vector.broadcast %0 : f32 to vector<30x120xf32>
    %32 = arith.addf %26, %31 : vector<30x120xf32>
    %cst_26 = arith.constant 0.000000e+00 : f32
    %33 = vector.broadcast %cst_26 : f32 to vector<30x120xf32>
    %34 = arith.minimumf %32, %33 : vector<30x120xf32>
    %35 = arith.addf %30, %34 : vector<30x120xf32>
    %36 = arith.mulf %35, %24 : vector<30x120xf32>
    %37 = vector.extract_strided_slice %25 {offsets = [0, 0], sizes = [15, 60], strides = [1, 1]} : vector<30x60xf32> to vector<15x60xf32>
    %cst_27 = arith.constant dense<0.000000e+00> : vector<15x60xf32>
    %38 = tpu.matmul %37, %23, %cst_27 {dimension_numbers = #tpu.dot_dimension_numbers<[1], [0], [0], [1], [0, 0, 1, 1], [], []>} : vector<15x60xf32>, vector<60x60xf32>, vector<15x60xf32> -> vector<15x60xf32>
    %c0_28 = arith.constant 0 : index
    %c0_29 = arith.constant 0 : index
    %39 = vector.load %arg19[%c0_28, %c0_29] : memref<30x15xf32, #tpu.memory_space<vmem>>, vector<30x15xf32>
    %c0_30 = arith.constant 0 : index
    %c0_31 = arith.constant 0 : index
    %40 = vector.load %arg20[%c0_30, %c0_31] : memref<60x120xf32, #tpu.memory_space<vmem>>, vector<60x120xf32>
    %c0_32 = arith.constant 0 : index
    %c0_33 = arith.constant 0 : index
    %41 = vector.load %arg21[%c0_32, %c0_33] : memref<60x60xf32, #tpu.memory_space<vmem>>, vector<60x60xf32>
    %c0_34 = arith.constant 0 : index
    %c0_35 = arith.constant 0 : index
    %42 = vector.load %arg22[%c0_34, %c0_35] : memref<30x120xf32, #tpu.memory_space<vmem>>, vector<30x120xf32>
    %cst_36 = arith.constant dense<0.000000e+00> : vector<30x60xf32>
    %43 = tpu.matmul %39, %38, %cst_36 {dimension_numbers = #tpu.dot_dimension_numbers<[1], [0], [0], [1], [0, 0, 1, 1], [], []>} : vector<30x15xf32>, vector<15x60xf32>, vector<30x60xf32> -> vector<30x60xf32>
    %cst_37 = arith.constant dense<0.000000e+00> : vector<30x120xf32>
    %44 = tpu.matmul %43, %40, %cst_37 {dimension_numbers = #tpu.dot_dimension_numbers<[1], [0], [0], [1], [0, 0, 1, 1], [], []>} : vector<30x60xf32>, vector<60x120xf32>, vector<30x120xf32> -> vector<30x120xf32>
    %45 = vector.broadcast %0 : f32 to vector<30x120xf32>
    %46 = arith.subf %44, %45 : vector<30x120xf32>
    %cst_38 = arith.constant 0.000000e+00 : f32
    %47 = vector.broadcast %cst_38 : f32 to vector<30x120xf32>
    %48 = arith.maximumf %46, %47 : vector<30x120xf32>
    %49 = vector.broadcast %0 : f32 to vector<30x120xf32>
    %50 = arith.addf %44, %49 : vector<30x120xf32>
    %cst_39 = arith.constant 0.000000e+00 : f32
    %51 = vector.broadcast %cst_39 : f32 to vector<30x120xf32>
    %52 = arith.minimumf %50, %51 : vector<30x120xf32>
    %53 = arith.addf %48, %52 : vector<30x120xf32>
    %54 = arith.mulf %53, %42 : vector<30x120xf32>
    %55 = vector.extract_strided_slice %43 {offsets = [0, 0], sizes = [15, 60], strides = [1, 1]} : vector<30x60xf32> to vector<15x60xf32>
    %cst_40 = arith.constant dense<0.000000e+00> : vector<15x60xf32>
    %56 = tpu.matmul %55, %41, %cst_40 {dimension_numbers = #tpu.dot_dimension_numbers<[1], [0], [0], [1], [0, 0, 1, 1], [], []>} : vector<15x60xf32>, vector<60x60xf32>, vector<15x60xf32> -> vector<15x60xf32>
    %c0_41 = arith.constant 0 : index
    %c0_42 = arith.constant 0 : index
    %57 = vector.load %arg23[%c0_41, %c0_42] : memref<16x30xf32, #tpu.memory_space<vmem>>, vector<16x30xf32>
    %c0_43 = arith.constant 0 : index
    %c0_44 = arith.constant 0 : index
    %58 = vector.load %arg24[%c0_43, %c0_44] : memref<120x64xf32, #tpu.memory_space<vmem>>, vector<120x64xf32>
    %c0_45 = arith.constant 0 : index
    %c0_46 = arith.constant 0 : index
    %59 = vector.load %arg25[%c0_45, %c0_46] : memref<16x15xf32, #tpu.memory_space<vmem>>, vector<16x15xf32>
    %c0_47 = arith.constant 0 : index
    %c0_48 = arith.constant 0 : index
    %60 = vector.load %arg26[%c0_47, %c0_48] : memref<60x64xf32, #tpu.memory_space<vmem>>, vector<60x64xf32>
    %cst_49 = arith.constant dense<0.000000e+00> : vector<16x60xf32>
    %61 = tpu.matmul %59, %56, %cst_49 {dimension_numbers = #tpu.dot_dimension_numbers<[1], [0], [0], [1], [0, 0, 1, 1], [], []>} : vector<16x15xf32>, vector<15x60xf32>, vector<16x60xf32> -> vector<16x60xf32>
    %cst_50 = arith.constant dense<0.000000e+00> : vector<16x64xf32>
    %62 = tpu.matmul %61, %60, %cst_50 {dimension_numbers = #tpu.dot_dimension_numbers<[1], [0], [0], [1], [0, 0, 1, 1], [], []>} : vector<16x60xf32>, vector<60x64xf32>, vector<16x64xf32> -> vector<16x64xf32>
    %cst_51 = arith.constant dense<0.000000e+00> : vector<16x120xf32>
    %63 = tpu.matmul %57, %54, %cst_51 {dimension_numbers = #tpu.dot_dimension_numbers<[1], [0], [0], [1], [0, 0, 1, 1], [], []>} : vector<16x30xf32>, vector<30x120xf32>, vector<16x120xf32> -> vector<16x120xf32>
    %cst_52 = arith.constant dense<0.000000e+00> : vector<16x64xf32>
    %64 = tpu.matmul %63, %58, %cst_52 {dimension_numbers = #tpu.dot_dimension_numbers<[1], [0], [0], [1], [0, 0, 1, 1], [], []>} : vector<16x120xf32>, vector<120x64xf32>, vector<16x64xf32> -> vector<16x64xf32>
    %65 = arith.addf %62, %64 : vector<16x64xf32>
    %c0_53 = arith.constant 0 : index
    %c0_54 = arith.constant 0 : index
    %66 = vector.load %arg15[%c0_53, %c0_54] : memref<16x30xf32, #tpu.memory_space<vmem>>, vector<16x30xf32>
    %c0_55 = arith.constant 0 : index
    %c0_56 = arith.constant 0 : index
    %67 = vector.load %arg16[%c0_55, %c0_56] : memref<120x64xf32, #tpu.memory_space<vmem>>, vector<120x64xf32>
    %c0_57 = arith.constant 0 : index
    %c0_58 = arith.constant 0 : index
    %68 = vector.load %arg17[%c0_57, %c0_58] : memref<16x16xf32, #tpu.memory_space<vmem>>, vector<16x16xf32>
    %c0_59 = arith.constant 0 : index
    %c0_60 = arith.constant 0 : index
    %69 = vector.load %arg18[%c0_59, %c0_60] : memref<64x64xf32, #tpu.memory_space<vmem>>, vector<64x64xf32>
    %cst_61 = arith.constant dense<0.000000e+00> : vector<16x64xf32>
    %70 = tpu.matmul %68, %65, %cst_61 {dimension_numbers = #tpu.dot_dimension_numbers<[1], [0], [0], [1], [0, 0, 1, 1], [], []>} : vector<16x16xf32>, vector<16x64xf32>, vector<16x64xf32> -> vector<16x64xf32>
    %cst_62 = arith.constant dense<0.000000e+00> : vector<16x64xf32>
    %71 = tpu.matmul %70, %69, %cst_62 {dimension_numbers = #tpu.dot_dimension_numbers<[1], [0], [0], [1], [0, 0, 1, 1], [], []>} : vector<16x64xf32>, vector<64x64xf32>, vector<16x64xf32> -> vector<16x64xf32>
    %cst_63 = arith.constant dense<0.000000e+00> : vector<16x120xf32>
    %72 = tpu.matmul %66, %36, %cst_63 {dimension_numbers = #tpu.dot_dimension_numbers<[1], [0], [0], [1], [0, 0, 1, 1], [], []>} : vector<16x30xf32>, vector<30x120xf32>, vector<16x120xf32> -> vector<16x120xf32>
    %cst_64 = arith.constant dense<0.000000e+00> : vector<16x64xf32>
    %73 = tpu.matmul %72, %67, %cst_64 {dimension_numbers = #tpu.dot_dimension_numbers<[1], [0], [0], [1], [0, 0, 1, 1], [], []>} : vector<16x120xf32>, vector<120x64xf32>, vector<16x64xf32> -> vector<16x64xf32>
    %74 = arith.addf %71, %73 : vector<16x64xf32>
    %c0_65 = arith.constant 0 : index
    %c0_66 = arith.constant 0 : index
    %75 = vector.load %arg7[%c0_65, %c0_66] : memref<16x30xf32, #tpu.memory_space<vmem>>, vector<16x30xf32>
    %c0_67 = arith.constant 0 : index
    %c0_68 = arith.constant 0 : index
    %76 = vector.load %arg8[%c0_67, %c0_68] : memref<120x64xf32, #tpu.memory_space<vmem>>, vector<120x64xf32>
    %c0_69 = arith.constant 0 : index
    %c0_70 = arith.constant 0 : index
    %77 = vector.load %arg9[%c0_69, %c0_70] : memref<16x16xf32, #tpu.memory_space<vmem>>, vector<16x16xf32>
    %c0_71 = arith.constant 0 : index
    %c0_72 = arith.constant 0 : index
    %78 = vector.load %arg10[%c0_71, %c0_72] : memref<64x64xf32, #tpu.memory_space<vmem>>, vector<64x64xf32>
    %cst_73 = arith.constant dense<0.000000e+00> : vector<16x64xf32>
    %79 = tpu.matmul %77, %74, %cst_73 {dimension_numbers = #tpu.dot_dimension_numbers<[1], [0], [0], [1], [0, 0, 1, 1], [], []>} : vector<16x16xf32>, vector<16x64xf32>, vector<16x64xf32> -> vector<16x64xf32>
    %cst_74 = arith.constant dense<0.000000e+00> : vector<16x64xf32>
    %80 = tpu.matmul %79, %78, %cst_74 {dimension_numbers = #tpu.dot_dimension_numbers<[1], [0], [0], [1], [0, 0, 1, 1], [], []>} : vector<16x64xf32>, vector<64x64xf32>, vector<16x64xf32> -> vector<16x64xf32>
    %cst_75 = arith.constant dense<0.000000e+00> : vector<16x120xf32>
    %81 = tpu.matmul %75, %18, %cst_75 {dimension_numbers = #tpu.dot_dimension_numbers<[1], [0], [0], [1], [0, 0, 1, 1], [], []>} : vector<16x30xf32>, vector<30x120xf32>, vector<16x120xf32> -> vector<16x120xf32>
    %cst_76 = arith.constant dense<0.000000e+00> : vector<16x64xf32>
    %82 = tpu.matmul %81, %76, %cst_76 {dimension_numbers = #tpu.dot_dimension_numbers<[1], [0], [0], [1], [0, 0, 1, 1], [], []>} : vector<16x120xf32>, vector<120x64xf32>, vector<16x64xf32> -> vector<16x64xf32>
    %83 = arith.addf %80, %82 : vector<16x64xf32>
    %c0_77 = arith.constant 0 : index
    %c0_78 = arith.constant 0 : index
    %c0_79 = arith.constant 0 : index
    %84 = vector.load %arg27[%c0_77, %c0_78, %c0_79] : memref<1x16x64xf32, #tpu.memory_space<vmem>>, vector<1x16x64xf32>
    %85 = vector.shape_cast %84 : vector<1x16x64xf32> to vector<16x64xf32>
    %86 = vector.shape_cast %83 : vector<16x64xf32> to vector<1x16x64xf32>
    tpu.vector_store %arg27[%c0_77, %c0_78, %c0_79], %86 {strides = array<i32>} : memref<1x16x64xf32, #tpu.memory_space<vmem>>, vector<1x16x64xf32>,
    return
  }
  func.func @transform_0(%arg0: i32) -> i32 {
    %c0_i32 = arith.constant 0 : i32
    %c0_i32_0 = arith.constant 0 : i32
    return %c0_i32 : i32
  }
  func.func @transform_1(%arg0: i32) -> (i32, i32, i32) {
    %c0_i32 = arith.constant 0 : i32
    %c0_i32_0 = arith.constant 0 : i32
    %c0_i32_1 = arith.constant 0 : i32
    return %arg0, %c0_i32, %c0_i32_0 : i32, i32, i32
  }
  func.func @transform_2(%arg0: i32) -> (i32, i32) {
    %c0_i32 = arith.constant 0 : i32
    %c0_i32_0 = arith.constant 0 : i32
    %c0_i32_1 = arith.constant 0 : i32
    return %c0_i32, %c0_i32_0 : i32, i32
  }
  func.func @transform_3(%arg0: i32) -> (i32, i32) {
    %c0_i32 = arith.constant 0 : i32
    %c0_i32_0 = arith.constant 0 : i32
    %c0_i32_1 = arith.constant 0 : i32
    return %c0_i32, %c0_i32_0 : i32, i32
  }
  func.func @transform_4(%arg0: i32) -> (i32, i32) {
    %c0_i32 = arith.constant 0 : i32
    %c0_i32_0 = arith.constant 0 : i32
    %c0_i32_1 = arith.constant 0 : i32
    return %c0_i32, %c0_i32_0 : i32, i32
  }
  func.func @transform_5(%arg0: i32) -> (i32, i32) {
    %c0_i32 = arith.constant 0 : i32
    %c0_i32_0 = arith.constant 0 : i32
    %c0_i32_1 = arith.constant 0 : i32
    return %c0_i32, %c0_i32_0 : i32, i32
  }
  func.func @transform_6(%arg0: i32) -> (i32, i32) {
    %c0_i32 = arith.constant 0 : i32
    %c0_i32_0 = arith.constant 0 : i32
    %c0_i32_1 = arith.constant 0 : i32
    return %c0_i32, %c0_i32_0 : i32, i32
  }
  func.func @transform_7(%arg0: i32) -> (i32, i32) {
    %c0_i32 = arith.constant 0 : i32
    %c0_i32_0 = arith.constant 0 : i32
    %c0_i32_1 = arith.constant 0 : i32
    return %c0_i32, %c0_i32_0 : i32, i32
  }
  func.func @transform_8(%arg0: i32) -> (i32, i32) {
    %c0_i32 = arith.constant 0 : i32
    %c0_i32_0 = arith.constant 0 : i32
    %c0_i32_1 = arith.constant 0 : i32
    return %c0_i32, %c0_i32_0 : i32, i32
  }
  func.func @transform_9(%arg0: i32) -> (i32, i32) {
    %c0_i32 = arith.constant 0 : i32
    %c0_i32_0 = arith.constant 0 : i32
    %c0_i32_1 = arith.constant 0 : i32
    return %c0_i32, %c0_i32_0 : i32, i32
  }
  func.func @transform_10(%arg0: i32) -> (i32, i32) {
    %c0_i32 = arith.constant 0 : i32
    %c0_i32_0 = arith.constant 0 : i32
    %c0_i32_1 = arith.constant 0 : i32
    return %c0_i32, %c0_i32_0 : i32, i32
  }
  func.func @transform_11(%arg0: i32) -> (i32, i32) {
    %c0_i32 = arith.constant 0 : i32
    %c0_i32_0 = arith.constant 0 : i32
    %c0_i32_1 = arith.constant 0 : i32
    return %c0_i32, %c0_i32_0 : i32, i32
  }
  func.func @transform_12(%arg0: i32) -> (i32, i32) {
    %c0_i32 = arith.constant 0 : i32
    %c0_i32_0 = arith.constant 0 : i32
    %c0_i32_1 = arith.constant 0 : i32
    return %c0_i32, %c0_i32_0 : i32, i32
  }
  func.func @transform_13(%arg0: i32) -> (i32, i32) {
    %c0_i32 = arith.constant 0 : i32
    %c0_i32_0 = arith.constant 0 : i32
    %c0_i32_1 = arith.constant 0 : i32
    return %c0_i32, %c0_i32_0 : i32, i32
  }
  func.func @transform_14(%arg0: i32) -> (i32, i32) {
    %c0_i32 = arith.constant 0 : i32
    %c0_i32_0 = arith.constant 0 : i32
    %c0_i32_1 = arith.constant 0 : i32
    return %c0_i32, %c0_i32_0 : i32, i32
  }
  func.func @transform_15(%arg0: i32) -> (i32, i32) {
    %c0_i32 = arith.constant 0 : i32
    %c0_i32_0 = arith.constant 0 : i32
    %c0_i32_1 = arith.constant 0 : i32
    return %c0_i32, %c0_i32_0 : i32, i32
  }
  func.func @transform_16(%arg0: i32) -> (i32, i32) {
    %c0_i32 = arith.constant 0 : i32
    %c0_i32_0 = arith.constant 0 : i32
    %c0_i32_1 = arith.constant 0 : i32
    return %c0_i32, %c0_i32_0 : i32, i32
  }
  func.func @transform_17(%arg0: i32) -> (i32, i32) {
    %c0_i32 = arith.constant 0 : i32
    %c0_i32_0 = arith.constant 0 : i32
    %c0_i32_1 = arith.constant 0 : i32
    return %c0_i32, %c0_i32_0 : i32, i32
  }
  func.func @transform_18(%arg0: i32) -> (i32, i32) {
    %c0_i32 = arith.constant 0 : i32
    %c0_i32_0 = arith.constant 0 : i32
    %c0_i32_1 = arith.constant 0 : i32
    return %c0_i32, %c0_i32_0 : i32, i32
  }
  func.func @transform_19(%arg0: i32) -> (i32, i32) {
    %c0_i32 = arith.constant 0 : i32
    %c0_i32_0 = arith.constant 0 : i32
    %c0_i32_1 = arith.constant 0 : i32
    return %c0_i32, %c0_i32_0 : i32, i32
  }
  func.func @transform_20(%arg0: i32) -> (i32, i32) {
    %c0_i32 = arith.constant 0 : i32
    %c0_i32_0 = arith.constant 0 : i32
    %c0_i32_1 = arith.constant 0 : i32
    return %c0_i32, %c0_i32_0 : i32, i32
  }
  func.func @transform_21(%arg0: i32) -> (i32, i32) {
    %c0_i32 = arith.constant 0 : i32
    %c0_i32_0 = arith.constant 0 : i32
    %c0_i32_1 = arith.constant 0 : i32
    return %c0_i32, %c0_i32_0 : i32, i32
  }
  func.func @transform_22(%arg0: i32) -> (i32, i32) {
    %c0_i32 = arith.constant 0 : i32
    %c0_i32_0 = arith.constant 0 : i32
    %c0_i32_1 = arith.constant 0 : i32
    return %c0_i32, %c0_i32_0 : i32, i32
  }
  func.func @transform_23(%arg0: i32) -> (i32, i32) {
    %c0_i32 = arith.constant 0 : i32
    %c0_i32_0 = arith.constant 0 : i32
    %c0_i32_1 = arith.constant 0 : i32
    return %c0_i32, %c0_i32_0 : i32, i32
  }
  func.func @transform_24(%arg0: i32) -> (i32, i32) {
    %c0_i32 = arith.constant 0 : i32
    %c0_i32_0 = arith.constant 0 : i32
    %c0_i32_1 = arith.constant 0 : i32
    return %c0_i32, %c0_i32_0 : i32, i32
  }
  func.func @transform_25(%arg0: i32) -> (i32, i32) {
    %c0_i32 = arith.constant 0 : i32
    %c0_i32_0 = arith.constant 0 : i32
    %c0_i32_1 = arith.constant 0 : i32
    return %c0_i32, %c0_i32_0 : i32, i32
  }
  func.func @transform_26(%arg0: i32) -> (i32, i32, i32) {
    %c0_i32 = arith.constant 0 : i32
    %c0_i32_0 = arith.constant 0 : i32
    %c0_i32_1 = arith.constant 0 : i32
    return %arg0, %c0_i32, %c0_i32_0 : i32, i32, i32
  }
}

</mosaic_0001>

<bundles_post_ra>
// kernel: tpu_custom_call.1
= control target key start
LH: loop header
LB: loop body
LE: loop exit
PB: predicated region body
PF: predicated region fallthrough
CT: control target
= control target key end

     0   :  { %s5670_s0 = inlined_call_operand.<no memory space> [shape: f32[1], index: 0, kind: input, shape index: {}]   ;;  %s5671_s1 = inlined_call_operand.hbm [shape: f32[2,16,64], index: 1, kind: input, shape index: {}]   ;;  %s5672_s2 = inlined_call_operand.vmem [shape: f32[30,16], index: 2, kind: input, shape index: {}]   ;;  %s5673_s3 = inlined_call_operand.vmem [shape: f32[64,120], index: 3, kind: input, shape index: {}]   ;;  %s5674_s4 = inlined_call_operand.vmem [shape: f32[64,60], index: 4, kind: input, shape index: {}]   ;;  %s5675_s5 = inlined_call_operand.hbm [shape: f32[30,120], index: 5, kind: input, shape index: {}]   ;;  %s5676_s6 = inlined_call_operand.hbm [shape: f32[16,30], index: 6, kind: input, shape index: {}]   ;;  %s5677_s7 = inlined_call_operand.vmem [shape: f32[120,64], index: 7, kind: input, shape index: {}]   ;;  %s5678_s8 = inlined_call_operand.hbm [shape: f32[16,16], index: 8, kind: input, shape index: {}]   ;;  %s5679_s9 = inlined_call_operand.vmem [shape: f32[64,64], index: 9, kind: input, shape index: {}]   ;;  %s5680_s10 = inlined_call_operand.vmem [shape: f32[30,15], index: 10, kind: input, shape index: {}]   ;;  %s5681_s11 = inlined_call_operand.vmem [shape: f32[60,120], index: 11, kind: input, shape index: {}]   ;;  %s5682_s12 = inlined_call_operand.vmem [shape: f32[60,60], index: 12, kind: input, shape index: {}]   ;;  %s5683_s13 = inlined_call_operand.hbm [shape: f32[30,120], index: 13, kind: input, shape index: {}]   ;;  %s5684_s14 = inlined_call_operand.hbm [shape: f32[16,30], index: 14, kind: input, shape index: {}]   ;;  %s5685_s15 = inlined_call_operand.vmem [shape: f32[120,64], index: 15, kind: input, shape index: {}]   ;;  %s5686_s16 = inlined_call_operand.hbm [shape: f32[16,16], index: 16, kind: input, shape index: {}]   ;;  %s5687_s17 = inlined_call_operand.vmem [shape: f32[64,64], index: 17, kind: input, shape index: {}]   ;;  %s5688_s18 = inlined_call_operand.vmem [shape: f32[30,15], index: 18, kind: input, shape index: {}]   ;;  %s5689_s19 = inlined_call_operand.vmem [shape: f32[60,120], index: 19, kind: input, shape index: {}]   ;;  %s5690_s20 = inlined_call_operand.vmem [shape: f32[60,60], index: 20, kind: input, shape index: {}]   ;;  %s5691_s21 = inlined_call_operand.hbm [shape: f32[30,120], index: 21, kind: input, shape index: {}]   ;;  %s5692_s22 = inlined_call_operand.hbm [shape: f32[16,30], index: 22, kind: input, shape index: {}]   ;;  %s5693_s23 = inlined_call_operand.vmem [shape: f32[120,64], index: 23, kind: input, shape index: {}]   ;;  %s5694_s24 = inlined_call_operand.vmem [shape: f32[16,15], index: 24, kind: input, shape index: {}]   ;;  %s5695_s25 = inlined_call_operand.vmem [shape: f32[60,64], index: 25, kind: input, shape index: {}]   ;;  %s5696_s26 = inlined_call_operand.hbm [shape: f32[2,16,64], index: 26, kind: output, shape index: {}]  }
   0x1   :  { %5733 = sst [smem:[#allocation25_spill]] %s5670_s0 }
   0x2   :  { %5734 = sst [smem:[#allocation26_spill]] %s5671_s1 }
   0x3   :  { %5735 = sst [smem:[#allocation27_spill]] %s5672_s2 }
   0x4   :  { %5736 = sst [smem:[#allocation28_spill]] %s5673_s3 }
   0x5   :  { %5737 = sst [smem:[#allocation29_spill]] %s5674_s4 }
   0x6   :  { %5738 = sst [smem:[#allocation30_spill]] %s5675_s5 }
   0x7   :  { %5739 = sst [smem:[#allocation31_spill]] %s5676_s6 }
   0x8   :  { %5740 = sst [smem:[#allocation32_spill]] %s5677_s7  ;;  %s5757_s7 = sld [smem:[#allocation25_spill]] }
   0x9   :  { %5741 = sst [smem:[#allocation33_spill]] %s5678_s8 }
   0xa   :  { %5742 = sst [smem:[#allocation34_spill]] %s5679_s9 }
   0xb   :  { %5743 = sst [smem:[#allocation35_spill]] %s5680_s10 }
   0xc   :  { %5744 = sst [smem:[#allocation36_spill]] %s5681_s11 }
   0xd   :  { %5745 = sst [smem:[#allocation37_spill]] %s5682_s12 }
   0xe   :  { %5746 = sst [smem:[#allocation38_spill]] %s5683_s13 }
   0xf   :  { %5747 = sst [smem:[#allocation39_spill]] %s5684_s14 }
  0x10   :  { %5748 = sst [smem:[#allocation40_spill]] %s5685_s15 }
  0x11   :  { %5749 = sst [smem:[#allocation41_spill]] %s5687_s17 }
  0x12   :  { %5750 = sst [smem:[#allocation42_spill]] %s5688_s18 }
  0x13   :  { %5751 = sst [smem:[#allocation43_spill]] %s5689_s19 }
  0x14   :  { %5752 = sst [smem:[#allocation44_spill]] %s5690_s20 }
  0x15   :  { %5753 = sst [smem:[#allocation45_spill]] %s5693_s23 }
  0x16   :  { %5754 = sst [smem:[#allocation46_spill]] %s5694_s24 }
  0x17   :  { %5755 = sst [smem:[#allocation47_spill]] %s5695_s25 }
  0x18   :  { %5756 = sst [smem:[#allocation48_spill]] %s5696_s26 }
  0x19   :  { %31 = sst [smem:[#allocation2]] %s5757_s7 }
  0x1a   :  { %32 = vsyncpa [#allocation4], 0 }
  0x1b   :  { %34 = vsyncpa [#allocation4 + $0x1], 0 }
  0x1c   :  { %35 = vsyncpa [#allocation7], 0 }
  0x1d   :  { %36 = vsyncpa [#allocation10], 0 }
  0x1e   :  { %37 = vsyncpa [#allocation13], 0 }
  0x1f   :  { %38 = vsyncpa [#allocation16], 0 }
  0x20   :  { %39 = vsyncpa [#allocation5], 0 }
  0x21   :  { %41 = vsyncpa [#allocation5 + $0x1], 0  ;;  %s4724_s28 = smov 0   ;;  %s4726_s8 = smov 0  }
  0x22   :  { %s4728_s4 = smov 0   ;;  %s4730_s29 = smov 0  }
  0x23 LB: > { %s4571_s0 = smov [#allocation6]   ;;  %s4745_s30 = sadd.s32 4294967295, %s4569_s29   ;;  %s4569_s29 = sphi %s4730_s29, %s5815_s29   ;;  %s4565_s4 = sphi %s4728_s4, %s5814_s4   ;;  %s4561_s8 = sphi %s4726_s8, %s5813_s8   ;;  %s4557_s28 = sphi %s4724_s28, %s5812_s28  }
  0x24   : > { %s653_s9 = sshll.u32 %s4571_s0, 4  ;;  %p3143_p0 = scmp.ge.s32.totalorder %s4569_s29, 1  ;;  %s4750_s9 = int_to_ptr.vmem [resolvable:$true] %s653_s9 }
  0x25   : > { %p5717_p1 = scmp.eq.s32.totalorder %s4745_s30, 0  ;;  %p629_p2 = scmp.lt.s32.totalorder %s4569_s29, 3 }
  0x26   : > { %s4572_s5 = smov [#allocation9]   ;;  %s4573_s1 = smov [#allocation12]  }
  0x27   : > { %p4752_p3 = pnand %p3143_p0, %p629_p2  ;;  %s682_s10 = sshll.u32 %s4572_s5, 4  ;;  %s4765_s10 = int_to_ptr.vmem [resolvable:$true] %s682_s10 }
  0x28   : > { %s720_s27 = sshll.u32 %s4573_s1, 4  ;;  %s5760_s0 = sld [smem:[#allocation30_spill]]  ;;  %s4767_s27 = int_to_ptr.vmem [resolvable:$true] %s720_s27 }
  0x29   : > { %s5758_s2 = scalar_select %p4752_p3, 1, 0 }
  0x2a   : > { %p4137_p5 = pneg %p4752_p3 }
  0x2c   : > { %p4761_p6 = pnand %p4137_p5, %p5717_p1 }
  0x2e   : > { %s4233_s26 = scalar_lea.hbm %s5760_s0, 512  ;;  %p4777_p8 = pneg %p4761_p6 }
  0x2f   : > { %p4234_p7 = scmp.ne.s32.totalorder %s5760_s0, %s4233_s26  ;;  %p4240_p11 = scmp.lt.u32.totalorder %s4233_s26, %s5760_s0 }
  0x31   : > { %p4236_p9 = pnand %p4777_p8, %p4234_p7 }
  0x33   : > { %p4237_p10 = pneg %p4236_p9 }
  0x35   : > { %p4242_p12 = pnand %p4240_p11, %p4237_p10 }
  0x37   : > { %4245 = shalt.err (!%p4242_p12)
}
  0x38   : > { %s4246_s15 = scalar_lea.vmem %s4750_s9, 512  ;;  %p4254_p5 = scmp.lt.s32.totalorder %s4750_s9, %s4750_s9 }
  0x39   : > { %p4247_p13 = scmp.ne.s32.totalorder %s4750_s9, %s4246_s15  ;;  %p4255_p4 = scmp.lt.s32.totalorder %s4246_s15, %s4246_s15 }
  0x3b   : > { %p4249_p0 = pnand %p4247_p13, %p4777_p8  ;;  %p4256_p7 = por %p4255_p4, %p4254_p5 }
  0x3d   : > { %p4250_p2 = pneg %p4249_p0 }
  0x3f   : > { %p4257_p9 = pnand %p4256_p7, %p4250_p2 }
  0x41   : > { %4260 = shalt.err (!%p4257_p9)
}
  0x42   : > { %s5719_s17 = smov 128   ;;  %s5720_s25 = smov 8  }
  0x43   : > { %4140 = dma.hbm_to_vmem [thread:$0]  (!%p4761_p6), %s5760_s0, 512, %s4750_s9, [#allocation7], %s5719_s17, %s5719_s17, %s5720_s25  }
  0x44   : > { %s5762_s23 = sld [smem:[#allocation33_spill]] }
  0x4a   : > { %s4261_s15 = scalar_lea.hbm %s5762_s23, 256 }
  0x4b   : > { %p4262_p4 = scmp.ne.s32.totalorder %s5762_s23, %s4261_s15  ;;  %p4268_p12 = scmp.lt.u32.totalorder %s4261_s15, %s5762_s23 }
  0x4d   : > { %p4264_p10 = pnand %p4262_p4, %p4777_p8 }
  0x4f   : > { %p4265_p11 = pneg %p4264_p10 }
  0x51   : > { %p4270_p13 = pnand %p4268_p12, %p4265_p11 }
  0x53   : > { %4273 = shalt.err (!%p4270_p13)
}
  0x54   : > { %s4274_s9 = scalar_lea.vmem %s4765_s10, 256  ;;  %p4282_p7 = scmp.lt.s32.totalorder %s4765_s10, %s4765_s10 }
  0x55   : > { %p4275_p0 = scmp.ne.s32.totalorder %s4765_s10, %s4274_s9  ;;  %p4283_p9 = scmp.lt.s32.totalorder %s4274_s9, %s4274_s9 }
  0x57   : > { %p4277_p2 = pnand %p4275_p0, %p4777_p8  ;;  %p4284_p4 = por %p4283_p9, %p4282_p7 }
  0x59   : > { %p4278_p5 = pneg %p4277_p2 }
  0x5b   : > { %p4285_p10 = pnand %p4284_p4, %p4278_p5 }
  0x5d   : > { %4288 = shalt.err (!%p4285_p10)
}
  0x5e   : > { %4146 = dma.hbm_to_vmem [thread:$0]  (!%p4761_p6), %s5762_s23, 256, %s4765_s10, [#allocation10], %s5719_s17, %s5719_s17, %s5720_s25  }
  0x5f   : > { %s5763_s14 = sld [smem:[#allocation39_spill]] }
  0x65   : > { %s4289_s26 = scalar_lea.hbm %s5763_s14, 256 }
  0x66   : > { %p4290_p11 = scmp.ne.s32.totalorder %s5763_s14, %s4289_s26  ;;  %p4296_p0 = scmp.lt.u32.totalorder %s4289_s26, %s5763_s14 }
  0x68   : > { %p4292_p12 = pnand %p4290_p11, %p4777_p8 }
  0x6a   : > { %p4293_p13 = pneg %p4292_p12 }
  0x6c   : > { %p4298_p2 = pnand %p4296_p0, %p4293_p13 }
  0x6e   : > { %4301 = shalt.err (!%p4298_p2)
}
  0x6f   : > { %s4302_s10 = scalar_lea.vmem %s4767_s27, 256  ;;  %p4310_p4 = scmp.lt.s32.totalorder %s4767_s27, %s4767_s27 }
  0x70   : > { %p4303_p5 = scmp.ne.s32.totalorder %s4767_s27, %s4302_s10  ;;  %p4311_p10 = scmp.lt.s32.totalorder %s4302_s10, %s4302_s10 }
  0x72   : > { %p4305_p7 = pnand %p4303_p5, %p4777_p8  ;;  %p4312_p11 = por %p4311_p10, %p4310_p4 }
  0x74   : > { %p4306_p9 = pneg %p4305_p7 }
  0x76   : > { %p4313_p12 = pnand %p4312_p11, %p4306_p9 }
  0x78   : > { %4316 = shalt.err (!%p4313_p12)
}
  0x79   : > { %4152 = dma.hbm_to_vmem [thread:$0]  (!%p4761_p6), %s5763_s14, 256, %s4767_s27, [#allocation13], %s5719_s17, %s5719_s17, %s5720_s25  }
  0x7a   : > { %s4576_s19 = smov [#allocation15]   ;;  %s4577_s24 = smov [#allocation8]  }
  0x7b   : > { %s761_s20 = sshll.u32 %s4576_s19, 4  ;;  %s666_s26 = sshll.u32 %s4577_s24, 4  ;;  %s762_s20 = int_to_ptr.vmem [resolvable:$true] %s761_s20  ;;  %s667_s26 = int_to_ptr.vmem [resolvable:$true] %s666_s26 }
  0x7c   : > { %s4317_s1 = scalar_lea.hbm %s5691_s21, 512 }
  0x7d   : > { %p4318_p13 = scmp.ne.s32.totalorder %s5691_s21, %s4317_s1  ;;  %p4324_p5 = scmp.lt.u32.totalorder %s4317_s1, %s5691_s21 }
  0x7f   : > { %p4320_p0 = pnand %p4318_p13, %p4777_p8 }
  0x81   : > { %p4321_p2 = pneg %p4320_p0 }
  0x83   : > { %p4326_p7 = pnand %p4324_p5, %p4321_p2 }
  0x85   : > { %4329 = shalt.err (!%p4326_p7)
}
  0x86   : > { %s4330_s27 = scalar_lea.vmem %s762_s20, 512  ;;  %p4338_p11 = scmp.lt.s32.totalorder %s762_s20, %s762_s20 }
  0x87   : > { %p4331_p9 = scmp.ne.s32.totalorder %s762_s20, %s4330_s27  ;;  %p4339_p12 = scmp.lt.s32.totalorder %s4330_s27, %s4330_s27 }
  0x89   : > { %p4333_p4 = pnand %p4331_p9, %p4777_p8  ;;  %p4340_p1 = por %p4339_p12, %p4338_p11 }
  0x8b   : > { %p4334_p10 = pneg %p4333_p4 }
  0x8d   : > { %p4341_p3 = pnand %p4340_p1, %p4334_p10 }
  0x8f   : > { %4344 = shalt.err (!%p4341_p3)
}
  0x90   : > { %4158 = dma.hbm_to_vmem [thread:$0]  (!%p4761_p6), %s5691_s21, 512, %s762_s20, [#allocation16], %s5719_s17, %s5719_s17, %s5720_s25  }
  0x91   : > { %s5764_s3 = sld [smem:[#allocation31_spill]] }
  0x97   : > { %s4345_s7 = scalar_lea.hbm %s5764_s3, 256 }
  0x98   : > { %p4346_p1 = scmp.ne.s32.totalorder %s5764_s3, %s4345_s7  ;;  %p4352_p0 = scmp.lt.u32.totalorder %s4345_s7, %s5764_s3 }
  0x9a   : > { %p4348_p3 = pnand %p4346_p1, %p4777_p8 }
  0x9c   : > { %p4349_p13 = pneg %p4348_p3 }
  0x9e   : > { %p4354_p2 = pnand %p4352_p0, %p4349_p13 }
  0xa0   : > { %4357 = shalt.err (!%p4354_p2)
}
  0xa1   : > { %s4358_s27 = scalar_lea.vmem %s667_s26, 256  ;;  %p4366_p4 = scmp.lt.s32.totalorder %s667_s26, %s667_s26 }
  0xa2   : > { %p4359_p5 = scmp.ne.s32.totalorder %s667_s26, %s4358_s27  ;;  %p4367_p10 = scmp.lt.s32.totalorder %s4358_s27, %s4358_s27 }
  0xa4   : > { %p4361_p7 = pnand %p4359_p5, %p4777_p8  ;;  %p4368_p11 = por %p4367_p10, %p4366_p4 }
  0xa6   : > { %p4362_p9 = pneg %p4361_p7 }
  0xa8   : > { %p4369_p12 = pnand %p4368_p11, %p4362_p9 }
  0xaa   : > { %4372 = shalt.err (!%p4369_p12)
}
  0xab   : > { %4143 = dma.hbm_to_vmem [thread:$0]  (!%p4761_p6), %s5764_s3, 256, %s667_s26, [#allocation7], %s5719_s17, %s5719_s17, %s5720_s25  }
  0xac   : > { %s4578_s18 = smov [#allocation11]   ;;  %s4579_s24 = smov [#allocation14]  }
  0xad   : > { %s707_s19 = sshll.u32 %s4578_s18, 4  ;;  %s736_s7 = sshll.u32 %s4579_s24, 4  ;;  %s708_s19 = int_to_ptr.vmem [resolvable:$true] %s707_s19  ;;  %s737_s7 = int_to_ptr.vmem [resolvable:$true] %s736_s7 }
  0xae   : > { %s5765_s13 = sld [smem:[#allocation38_spill]] }
  0xb4   : > { %s4373_s10 = scalar_lea.hbm %s5765_s13, 512 }
  0xb5   : > { %p4374_p1 = scmp.ne.s32.totalorder %s5765_s13, %s4373_s10  ;;  %p4380_p0 = scmp.lt.u32.totalorder %s4373_s10, %s5765_s13 }
  0xb7   : > { %p4376_p3 = pnand %p4374_p1, %p4777_p8 }
  0xb9   : > { %p4377_p13 = pneg %p4376_p3 }
  0xbb   : > { %p4382_p2 = pnand %p4380_p0, %p4377_p13 }
  0xbd   : > { %4385 = shalt.err (!%p4382_p2)
}
  0xbe   : > { %s4386_s26 = scalar_lea.vmem %s708_s19, 512  ;;  %p4394_p4 = scmp.lt.s32.totalorder %s708_s19, %s708_s19 }
  0xbf   : > { %p4387_p5 = scmp.ne.s32.totalorder %s708_s19, %s4386_s26  ;;  %p4395_p10 = scmp.lt.s32.totalorder %s4386_s26, %s4386_s26 }
  0xc1   : > { %p4389_p7 = pnand %p4387_p5, %p4777_p8  ;;  %p4396_p11 = por %p4395_p10, %p4394_p4 }
  0xc3   : > { %p4390_p9 = pneg %p4389_p7 }
  0xc5   : > { %p4397_p12 = pnand %p4396_p11, %p4390_p9 }
  0xc7   : > { %4400 = shalt.err (!%p4397_p12)
}
  0xc8   : > { %4149 = dma.hbm_to_vmem [thread:$0]  (!%p4761_p6), %s5765_s13, 512, %s708_s19, [#allocation10], %s5719_s17, %s5719_s17, %s5720_s25  }
  0xc9   : > { %s4401_s1 = scalar_lea.hbm %s5686_s16, 256 }
  0xca   : > { %p4402_p1 = scmp.ne.s32.totalorder %s5686_s16, %s4401_s1  ;;  %p4408_p0 = scmp.lt.u32.totalorder %s4401_s1, %s5686_s16 }
  0xcc   : > { %p4404_p3 = pnand %p4402_p1, %p4777_p8 }
  0xce   : > { %p4405_p13 = pneg %p4404_p3 }
  0xd0   : > { %p4410_p2 = pnand %p4408_p0, %p4405_p13 }
  0xd2   : > { %4413 = shalt.err (!%p4410_p2)
}
  0xd3   : > { %s4414_s20 = scalar_lea.vmem %s737_s7, 256  ;;  %p4422_p4 = scmp.lt.s32.totalorder %s737_s7, %s737_s7 }
  0xd4   : > { %p4415_p5 = scmp.ne.s32.totalorder %s737_s7, %s4414_s20  ;;  %p4423_p10 = scmp.lt.s32.totalorder %s4414_s20, %s4414_s20 }
  0xd6   : > { %p4417_p7 = pnand %p4415_p5, %p4777_p8  ;;  %p4424_p11 = por %p4423_p10, %p4422_p4 }
  0xd8   : > { %p4418_p9 = pneg %p4417_p7 }
  0xda   : > { %p4425_p12 = pnand %p4424_p11, %p4418_p9 }
  0xdc   : > { %4428 = shalt.err (!%p4425_p12)
}
  0xdd   : > { %4155 = dma.hbm_to_vmem [thread:$0]  (!%p4761_p6), %s5686_s16, 256, %s737_s7, [#allocation13], %s5719_s17, %s5719_s17, %s5720_s25  }
  0xde   : > { %s4580_s14 = smov [#allocation17]   ;;  %s4429_s1 = scalar_lea.hbm %s5692_s22, 256 }
  0xdf   : > { %s774_s0 = sshll.u32 %s4580_s14, 4  ;;  %p4430_p1 = scmp.ne.s32.totalorder %s5692_s22, %s4429_s1  ;;  %s775_s0 = int_to_ptr.vmem [resolvable:$true] %s774_s0 }
  0xe0   : > { %p4436_p0 = scmp.lt.u32.totalorder %s4429_s1, %s5692_s22 }
  0xe1   : > { %p4432_p3 = pnand %p4430_p1, %p4777_p8 }
  0xe3   : > { %p4433_p13 = pneg %p4432_p3 }
  0xe5   : > { %p4438_p2 = pnand %p4436_p0, %p4433_p13 }
  0xe7   : > { %4441 = shalt.err (!%p4438_p2)
}
  0xe8   : > { %s4442_s7 = scalar_lea.vmem %s775_s0, 256  ;;  %p4450_p4 = scmp.lt.s32.totalorder %s775_s0, %s775_s0 }
  0xe9   : > { %p4443_p5 = scmp.ne.s32.totalorder %s775_s0, %s4442_s7  ;;  %p4451_p10 = scmp.lt.s32.totalorder %s4442_s7, %s4442_s7 }
  0xeb   : > { %p4445_p7 = pnand %p4443_p5, %p4777_p8  ;;  %p4452_p11 = por %p4451_p10, %p4450_p4 }
  0xed   : > { %p4446_p9 = pneg %p4445_p7 }
  0xef   : > { %p4453_p12 = pnand %p4452_p11, %p4446_p9 }
  0xf1   : > { %4456 = shalt.err (!%p4453_p12)
}
  0xf2   : > { %4161 = dma.hbm_to_vmem [thread:$0]  (!%p4761_p6), %s5692_s22, 256, %s775_s0, [#allocation16], %s5719_s17, %s5719_s17, %s5720_s25  }
  0xf3   : > { %s3142_s6 = sadd.s32 4294967294, %s4569_s29   ;;  %s4960_s5 = sadd.s32 1, %s4569_s29  }
  0xf4   : > { %s72_s26 = ssub.s32 %s4569_s29, %s4960_s5  ;;  %s75_s14 = sadd.s32 1, %s4565_s4 }
  0xf5   : > { %p73_p8 = scmp.eq.s32.totalorder %s72_s26, 0  ;;  %p82_p1 = scmp.ne.s32.totalorder %s4565_s4, %s4561_s8 }
  0xf6   : > { %p83_p3 = scmp.eq.s32.totalorder %s4569_s29, 0  ;;  %p88_p13 = scmp.ne.s32.totalorder %s4561_s8, %s4557_s28 }
  0xf7   : > { %s4971_s18 = scalar_select %p73_p8, %s4565_s4, %s75_s14  }
  0xf8   : > { %p4973_p0 = por %p83_p3, %p82_p1  ;;  %p5767_p2 = scmp.eq.s32.totalorder %s4745_s30, 0 }
  0xf9   : > { %p616_p5 = scmp.eq.s32.totalorder %s4745_s30, 1  ;;  %p622_p7 = scmp.eq.s32.totalorder %s3142_s6, 1 }
  0xfa   : > { %p4979_p6 = por %p5767_p2, %p88_p13  ;;  %p4178_p9 = scmp.lt.s32.totalorder %s4569_s29, 2 }
  0xfb   : > { %s797_s1 = sand.u32 1, %s4565_s4   ;;  %p4986_p4 = por %p616_p5, %p82_p1 }
  0xfc   : > { %p4990_p10 = por %p622_p7, %p88_p13  ;;  %s3153_s9 = sshll.u32 %s797_s1, 4 }
  0xfd   : > { %s5769_s15 = scalar_select %p4986_p4, 1, 0 }
  0xfe   : > { %s5770_s10 = scalar_select %p4990_p10, 1, 0 }
  0xff   : > { %s3237_s27 = sshll.u32 %s4569_s29, 8  ;;  %s5771_s19 = sld [smem:[#allocation26_spill]] }
 0x100   : > { %s801_s6 = scalar_lea.vmem [#allocation3], %s3153_s9  ;;  %p5004_p11 = pnand %p4178_p9, %p4973_p0 }
 0x101   : > { %s808_s14 = sshll.u32 %s801_s6, 4  ;;  %s5008_s25 = scalar_lea.sflag [#allocation4], %s797_s1  ;;  %s5000_s14 = int_to_ptr.vmem [resolvable:$true] %s808_s14 }
 0x102   : > { %p4459_p8 = pneg %p5004_p11 }
 0x105   : > { %s4998_s26 = scalar_lea.hbm %s5771_s19, %s3237_s27  ;;  %s4462_s24 = scalar_lea.hbm %s5771_s19, 512 }
 0x106   : > { %s4457_s7 = scalar_lea.hbm %s4998_s26, 256  ;;  %p4463_p13 = scmp.lt.u32.totalorder %s4998_s26, %s5771_s19 }
 0x107   : > { %p4458_p12 = scmp.ne.s32.totalorder %s4998_s26, %s4457_s7  ;;  %p4464_p0 = scmp.lt.u32.totalorder %s4462_s24, %s4457_s7 }
 0x108   : > { %p4466_p5 = scmp.lt.u32.totalorder %s4457_s7, %s4998_s26 }
 0x109   : > { %p4460_p1 = pnand %p4459_p8, %p4458_p12  ;;  %p4465_p2 = por %p4464_p0, %p4463_p13 }
 0x10b   : > { %p4461_p3 = pneg %p4460_p1  ;;  %p4467_p7 = por %p4466_p5, %p4465_p2 }
 0x10d   : > { %p4468_p9 = pnand %p4467_p7, %p4461_p3 }
 0x10f   : > { %4471 = shalt.err (!%p4468_p9)
}
 0x110   : > { %s4472_s1 = scalar_lea.vmem %s5000_s14, 256  ;;  %s4581_s9 = smov [#allocation3]  }
 0x111   : > { %p4473_p12 = scmp.ne.s32.totalorder %s5000_s14, %s4472_s1  ;;  %s4477_s27 = sshll.u32 %s4581_s9, 4  ;;  %s4478_s27 = int_to_ptr.vmem [resolvable:$false] %s4477_s27 }
 0x112   : > { %s4479_s20 = scalar_lea.vmem %s4478_s27, 512  ;;  %p4480_p4 = scmp.lt.s32.totalorder %s5000_s14, %s4478_s27 }
 0x113   : > { %p4475_p1 = pnand %p4473_p12, %p4459_p8  ;;  %p4481_p13 = scmp.lt.s32.totalorder %s4479_s20, %s4472_s1 }
 0x115   : > { %p4476_p10 = pneg %p4475_p1  ;;  %p4482_p0 = por %p4481_p13, %p4480_p4 }
 0x117   : > { %p4483_p2 = pnand %p4482_p0, %p4476_p10 }
 0x119   : > { %4486 = shalt.err (!%p4483_p2)
}
 0x11a   : > { %s5773_s7 = smov 8   ;;  %s5774_s24 = smov 128  }
 0x11b   : > { %4165 = dma.hbm_to_vmem [thread:$0]  (!%p5004_p11), %s4998_s26, 256, %s5000_s14, %s5008_s25, %s5774_s24, %s5774_s24, %s5773_s7  }
 0x11c   : > { %p5775_p8 = scmp.ne.s32.totalorder %s5758_s2, 0 }
 0x11d   : > { %s5042_s6 = sand.u32 (!%p5775_p8), 1, %s4561_s8  }
 0x11e   : > { %820 = sbr.rel (%p5775_p8) target bundleno = 3015 (0xbc7), region = 124  ;;  %s5722_s1 = sshll.u32 (!%p5775_p8), %s5042_s6, 4 }
 0x11f   : > { %s823_s9 = scalar_lea.sflag (!%p5775_p8), [#allocation4], %s5042_s6  ;;  %s826_s17 = scalar_lea.vmem (!%p5775_p8), [#allocation3], %s5722_s1 }
 0x125   : > { %4532 = dma.done.wait (%p4979_p6), %s823_s9, 256  }
 0x126   : > { %4534 = vsyncadd (%p4979_p6), %s823_s9, 4294967040  ;;  %p5776_p4 = scmp.eq.s32.totalorder %s4745_s30, 0 }
 0x128   : > { %4536 = dma.done.wait (%p5776_p4), [#allocation7], 768   ;;  %p5777_p10 = pmov %p5776_p4 }
 0x129   : > { %p5778_p11 = pmov %p5776_p4 }
 0x12a   : > { %4538 = vsyncadd (%p5777_p10), [#allocation7], 4294966528 }
 0x12b   : > { %4540 = dma.done.wait (%p5778_p11), [#allocation10], 768   ;;  %p5779_p3 = pmov %p5776_p4 }
 0x12d   : > { %4542 = vsyncadd (%p5779_p3), [#allocation10], 4294966528  ;;  %p5780_p5 = pmov %p5779_p3 }
 0x12e   : > { %p5781_p7 = pmov %p5779_p3 }
 0x12f   : > { %4544 = dma.done.wait (%p5780_p5), [#allocation13], 512  }
 0x130   : > { %4546 = vsyncadd (%p5781_p7), [#allocation13], 4294966784  ;;  %p5782_p6 = pmov %p5779_p3 }
 0x131   : > { %p5783_p9 = pmov %p5779_p3 }
 0x132   : > { %4548 = dma.done.wait (%p5782_p6), [#allocation16], 768  }
 0x133   : > { %4550 = vsyncadd (%p5783_p9), [#allocation16], 4294966528  ;;  %vm954_vm0 = vcmask 130048   ;;  %v928_v0 = vld [vmem:[%s826_s17] sm:$0xff]  ;;  %v929_v1 = vld [vmem:[%s826_s17 + $0x8] sm:$0xff]  ;;  %s5784_s0 = sld [smem:[#allocation27_spill]] }
 0x134   : > { %v3797_v3 = vpack.c.bf16 %v929_v1, %v928_v0  ;;  %s5785_s27 = sld [smem:[#allocation28_spill]]  ;;  %s5786_s24 = sld [smem:[#allocation29_spill]]  ;;  %vm1052_vm1 = vcmask 523264   ;;  %vm1274_vm2 = vcmask 121856   ;;  %vm1389_vm3 = vcmask 1043456   ;;  %v951_v61 = vld [vmem:[#allocation6 + $0x8] sm:$0xff] }
 0x135   : > { %s5787_s20 = sld [smem:[#allocation35_spill]]  ;;  %s5788_s11 = sld [smem:[#allocation36_spill]]  ;;  %vm4582_vm4 = vmmov 1   ;;  %vm1287_vm6 = vcmask 1046528   ;;  %vm1376_vm8 = vcmask 490496   ;;  %vm2017_vm9 = vcmask 244736  }
 0x136   : > { %3798 = vmatprep.subr.bf16.mxu0 %v3797_v3  ;;  %vm5167_vm5 = vmpackc.low %vm1389_vm3, %vm4582_vm4  ;;  %s927_s2 = sld [smem:[#allocation2]]  ;;  %s5791_s12 = sld [smem:[#allocation37_spill]]  ;;  %vm2024_vm10 = vcmask 1045504   ;;  %vm2103_vm12 = vcmask 982016  }
 0x137   : > { %3800 = vmatpush3.bf16.msra.mxu0 %v3797_v3  ;;  %vm5196_vm7 = vmpackc.low %vm1287_vm6, %vm4582_vm4  ;;  %s5794_s9 = sld [smem:[#allocation42_spill]]  ;;  %s5795_s3 = sld [smem:[#allocation44_spill]] }
 0x138   : > { %s5796_s14 = sld [smem:[#allocation43_spill]]  ;;  %vm5384_vm11 = vmpackc.low %vm2024_vm10, %vm4582_vm4  ;;  %s5802_s17 = sld [smem:[#allocation40_spill]] }
 0x139   : > { %v930_v2 = vld [vmem:[%s5784_s0] sm:$0xff]  ;;  %v931_v9 = vld [vmem:[%s5784_s0 + $0x8] sm:$0xff]  ;;  %v932_v10 = vld [vmem:[%s5784_s0 + $0x10] sm:$0xff]  ;;  %s5804_s13 = sld [smem:[#allocation32_spill]]  ;;  %s5805_s26 = sld [smem:[#allocation34_spill]] }
 0x13a   : > { %3438 = vmatprep.mubr.msk.f32.mxu0 %vm954_vm0, %v930_v2  ;;  %v934_v4 = vld [vmem:[%s5785_s27] sm:$0xff]  ;;  %v935_v5 = vld [vmem:[%s5785_s27 + $0x8] sm:$0xff]  ;;  %v936_v6 = vld [vmem:[%s5785_s27 + $0x10] sm:$0xff]  ;;  %s5807_s25 = sld [smem:[#allocation48_spill]]  ;;  %p5808_p1 = scmp.ne.s32.totalorder %s5769_s15, 0 }
 0x13b   : > { %v3801_v7 = vpack.c.bf16 %v935_v5, %v934_v4  ;;  %v937_v8 = vld [vmem:[%s5785_s27 + $0x18] sm:$0xff]  ;;  %v938_v12 = vld [vmem:[%s5785_s27 + $0x20] sm:$0xff]  ;;  %v939_v13 = vld [vmem:[%s5785_s27 + $0x28] sm:$0xff]  ;;  %3439 = vmatmul.mubr.msk.f32.vlgmr.msra.gmra.mrb[0].mxu0 %vm954_vm0, %v931_v9 }
 0x13c   : > { %v3805_v11 = vpack.c.bf16 %v937_v8, %v936_v6  ;;  %3441 = vmatprep.mubr.msk.f32.mxu0 %vm954_vm0, %v932_v10  ;;  %v933_v14 = vld [vmem:[%s5784_s0 + $0x18] sm:$0x3f]  ;;  %v3809_v15 = vpack.c.bf16 %v939_v13, %v938_v12  ;;  %v940_v16 = vld [vmem:[%s5785_s27 + $0x30] sm:$0xff]  ;;  %v942_v19 = vld [vmem:[%s5786_s24] sm:$0xff]  ;;  %v5175_v49 = vstv %s927_s2  ;;  %s5797_s2 = sld [smem:[#allocation46_spill]]  ;;  %s5806_s0 = sshll.u32 %s5042_s6, 4 }
 0x13d   : > { %3802 = vmatprep.subr.bf16.mxu0 %v3801_v7  ;;  %v941_v17 = vld [vmem:[%s5785_s27 + $0x38] sm:$0xff]  ;;  %v943_v20 = vld [vmem:[%s5786_s24 + $0x8] sm:$0xff]  ;;  %v944_v22 = vld [vmem:[%s5786_s24 + $0x10] sm:$0xff] }
 0x13e   : > { %3804 = vmatpush3.bf16.msra.mxu0 %v3801_v7  ;;  %v3813_v18 = vpack.c.bf16 %v941_v17, %v940_v16  ;;  %v3817_v21 = vpack.c.bf16 %v943_v20, %v942_v19  ;;  %v945_v23 = vld [vmem:[%s5786_s24 + $0x18] sm:$0xff]  ;;  %v946_v27 = vld [vmem:[%s5786_s24 + $0x20] sm:$0xff]  ;;  %v947_v28 = vld [vmem:[%s5786_s24 + $0x28] sm:$0xff] }
 0x13f   : > { %3806 = vmatprep.subr.bf16.mxu0 %v3805_v11  ;;  %3442 = vmatmul.mubr.msk.f32.gmra.mrb[2].mxu0 %vm954_vm0, %v933_v14  ;;  %v3821_v26 = vpack.c.bf16 %v945_v23, %v944_v22  ;;  %v3825_v31 = vpack.c.bf16 %v947_v28, %v946_v27  ;;  %v948_v32 = vld [vmem:[%s5786_s24 + $0x30] sm:$0xff]  ;;  %v949_v33 = vld [vmem:[%s5786_s24 + $0x38] sm:$0xff]  ;;  %v1250_v35 = vld [vmem:[%s5787_s20] sm:$0xff] }
 0x140   : > { %v3829_v34 = vpack.c.bf16 %v949_v33, %v948_v32  ;;  %v1254_v36 = vld [vmem:[%s5788_s11] sm:$0xff]  ;;  %v1255_v37 = vld [vmem:[%s5788_s11 + $0x8] sm:$0xff]  ;;  %v1256_v39 = vld [vmem:[%s5788_s11 + $0x10] sm:$0xff] }
 0x141   : > { %v3839_v38 = vpack.c.bf16 %v1255_v37, %v1254_v36  ;;  %v1257_v40 = vld [vmem:[%s5788_s11 + $0x18] sm:$0xff]  ;;  %v1258_v42 = vld [vmem:[%s5788_s11 + $0x20] sm:$0xff]  ;;  %v1259_v43 = vld [vmem:[%s5788_s11 + $0x28] sm:$0xff] }
 0x142   : > { %3808 = vmatpush3.bf16.msra.mxu0 %v3805_v11  ;;  %v3843_v41 = vpack.c.bf16 %v1257_v40, %v1256_v39  ;;  %v3847_v44 = vpack.c.bf16 %v1259_v43, %v1258_v42  ;;  %v1260_v45 = vld [vmem:[%s5788_s11 + $0x30] sm:$0xff]  ;;  %v1261_v46 = vld [vmem:[%s5788_s11 + $0x38] sm:$0xf]  ;;  %v950_v2 = vld [vmem:[#allocation6] sm:$0xff] }
 0x143   : > { %3810 = vmatprep.subr.bf16.mxu0 %v3809_v15  ;;  %3840 = vmatprep.subr.bf16.mxu1 %v3839_v38  ;;  %v3851_v48 = vpack.c.bf16 %v1261_v46, %v1260_v45  ;;  %v953_v9 = vld [vmem:[#allocation6 + $0x18] sm:$0x3f]  ;;  %v952_v14 = vld [vmem:[#allocation6 + $0x10] sm:$0xff]  ;;  %v1262_v20 = vld [vmem:[%s5791_s12] sm:$0xff] }
 0x144   : > { %3842 = vmatpush3.bf16.msra.mxu1 %v3839_v38  ;;  %v1264_v27 = vld [vmem:[%s5791_s12 + $0x10] sm:$0xff]  ;;  %v1265_v28 = vld [vmem:[%s5791_s12 + $0x18] sm:$0xff]  ;;  %v1266_v32 = vld [vmem:[%s5791_s12 + $0x20] sm:$0xff] }
 0x145   : > { %3844 = vmatprep.subr.bf16.mxu1 %v3843_v41  ;;  %v1267_v33 = vld [vmem:[%s5791_s12 + $0x28] sm:$0xff]  ;;  %v1268_v36 = vld [vmem:[%s5791_s12 + $0x30] sm:$0xff]  ;;  %v1269_v37 = vld [vmem:[%s5791_s12 + $0x38] sm:$0xf] }
 0x146   : > { %3812 = vmatpush3.bf16.msra.mxu0 %v3809_v15  ;;  %v3869_v38 = vpack.c.bf16 %v1269_v37, %v1268_v36  ;;  %v1580_v43 = vld [vmem:[%s5794_s9] sm:$0xff]  ;;  %v1593_v45 = vld [vmem:[%s5795_s3 + $0x8] sm:$0xff] }
 0x147   : > { %3814 = vmatprep.subr.bf16.mxu0 %v3813_v18  ;;  %v2272_v47 = vld [vmem:[%s5802_s17 + $0x8] sm:$0xff] }
 0x148   : > { %3846 = vmatpush3.bf16.msra.mxu1 %v3843_v41 }
 0x149   : > { %3848 = vmatprep.subr.bf16.mxu1 %v3847_v44 }
 0x14a   : > { %3816 = vmatpush3.bf16.msra.mxu0 %v3813_v18 }
 0x14b   : > { %3818 = vmatprep.subr.bf16.mxu0 %v3817_v21 }
 0x14c   : > { %3850 = vmatpush3.bf16.msra.mxu1 %v3847_v44  ;;  %v1592_v44 = vld [vmem:[%s5795_s3] sm:$0xff] }
 0x14d   : > { %3853 = vmatprep.subr.msk.bf16.mxu1 %vm5167_vm5, %v3851_v48  ;;  %v3899_v46 = vpack.c.bf16 %v1593_v45, %v1592_v44  ;;  %v1273_v44 = vld [vmem:[#allocation11 + $0x18] sm:$0x3f]  ;;  %v1272_v45 = vld [vmem:[#allocation11 + $0x10] sm:$0xff] }
 0x150   : > { %3856 = vmatpush3.bf16.msk.msra.mxu1 %vm5167_vm5, %v3851_v48  ;;  %v1594_v48 = vld [vmem:[%s5795_s3 + $0x10] sm:$0xff] }
 0x151   : > { %3900 = vmatprep.subr.bf16.mxu1 %v3899_v46 }
 0x20e   : > { %v3440_v24 = vpop.f32.mrb[0].mxu0 }
 0x20f   : > { %v1033_v25 = vpop.f32.mrb[1].mxu0 }
 0x210   : > { %3460 = vmatprep.mubr.msk.f32.mxu0 %vm1052_vm1, %v1033_v25 }
 0x211   : > { %3461 = vmatmul.mubr.msk.f32.vlgmr.msra.gmra.mrb[4].mxu0 %vm1052_vm1, %v3440_v24 }
 0x212   : > { %3820 = vmatpush3.bf16.msra.mxu0 %v3817_v21  ;;  %v3443_v29 = vpop.f32.mrb[2].mxu0  ;;  %v1263_v21 = vld [vmem:[%s5791_s12 + $0x8] sm:$0xff]  ;;  %s5798_s12 = sld [smem:[#allocation45_spill]] }
 0x213   : > { %v1043_v30 = vpop.f32.mrb[3].mxu0  ;;  %3822 = vmatprep.subr.bf16.mxu0 %v3821_v26 }
 0x214   : > { %3463 = vmatprep.mubr.msk.f32.mxu0 %vm1052_vm1, %v1043_v30  ;;  %v3861_v30 = vpack.c.bf16 %v1265_v28, %v1264_v27  ;;  %v1583_v28 = vld [vmem:[%s5794_s9 + $0x18] sm:$0x3f] }
 0x215   : > { %3464 = vmatmul.mubr.msk.f32.gmra.mrb[6].mxu0 %vm1052_vm1, %v3443_v29  ;;  %v1251_v29 = vld [vmem:[%s5787_s20 + $0x8] sm:$0xff] }
 0x216   : > { %3824 = vmatpush3.bf16.msra.mxu0 %v3821_v26  ;;  %3482 = vmatprep.mubr.msk.f32.mxu0 %vm1052_vm1, %v1033_v25  ;;  %v3857_v26 = vpack.c.bf16 %v1263_v21, %v1262_v20  ;;  %v1582_v21 = vld [vmem:[%s5794_s9 + $0x10] sm:$0xff] }
 0x217   : > { %3826 = vmatprep.subr.bf16.mxu0 %v3825_v31 }
 0x21a   : > { %3828 = vmatpush3.bf16.msra.mxu0 %v3825_v31  ;;  %v1252_v31 = vld [vmem:[%s5787_s20 + $0x10] sm:$0xff] }
 0x21b   : > { %3830 = vmatprep.subr.bf16.mxu0 %v3829_v34 }
 0x21e   : > { %3832 = vmatpush3.bf16.msra.mxu0 %v3829_v34  ;;  %v1253_v34 = vld [vmem:[%s5787_s20 + $0x18] sm:$0x3f] }
 0x221   : > { %3483 = vmatmul.mubr.msk.f32.vlgmr.msra.gmra.mrb[8].mxu0 %vm1052_vm1, %v3440_v24  ;;  %v1912_v24 = vld [vmem:[%s5798_s12 + $0x20] sm:$0xff] }
 0x222   : > { %3489 = vmatprep.mubr.msk.f32.mxu0 %vm1274_vm2, %v1250_v35  ;;  %v3865_v35 = vpack.c.bf16 %v1267_v33, %v1266_v32  ;;  %v1591_v32 = vld [vmem:[%s5796_s14 + $0x38] sm:$0xf] }
 0x2e4   : > { %v3462_v50 = vpop.f32.mrb[4].mxu0 }
 0x2e5   : > { %v1152_v51 = vsub.f32 %v3462_v50, %v5175_v49  ;;  %v1160_v52 = vadd.f32 %v3462_v50, %v5175_v49  ;;  %v1131_v53 = vpop.f32.mrb[5].mxu0  ;;  %v1595_v50 = vld [vmem:[%s5795_s3 + $0x18] sm:$0xff] }
 0x2e6   : > { %v1151_v54 = vsub.f32 %v1131_v53, %v5175_v49  ;;  %v1159_v55 = vadd.f32 %v5175_v49, %v1131_v53  ;;  %v1597_v53 = vld [vmem:[%s5795_s3 + $0x28] sm:$0xff] }
 0x2e7   : > { %v1156_v56 = vmax.f32 %v1152_v51, 0.0  ;;  %v1164_v57 = vmin.f32 %v1160_v52, 0.0  ;;  %v3903_v51 = vpack.c.bf16 %v1595_v50, %v1594_v48  ;;  %v1596_v52 = vld [vmem:[%s5795_s3 + $0x20] sm:$0xff] }
 0x2e8   : > { %v1155_v58 = vmax.f32 %v1151_v54, 0.0  ;;  %v1163_v59 = vmin.f32 %v1159_v55, 0.0  ;;  %v3465_v60 = vpop.f32.mrb[6].mxu0  ;;  %v3907_v54 = vpack.c.bf16 %v1597_v53, %v1596_v52  ;;  %v1598_v55 = vld [vmem:[%s5795_s3 + $0x30] sm:$0xff] }
 0x2e9   : > { %v1168_v62 = vadd.f32 %v1164_v57, %v1156_v56  ;;  %v1154_v63 = vsub.f32 %v3465_v60, %v5175_v49  ;;  %v1162_v0 = vadd.f32 %v3465_v60, %v5175_v49  ;;  %v1141_v1 = vpop.f32.mrb[7].mxu0  ;;  %v1599_v56 = vld [vmem:[%s5795_s3 + $0x38] sm:$0xf]  ;;  %s5801_s3 = sld [smem:[#allocation47_spill]] }
 0x2ea   : > { %v1167_v3 = vadd.f32 %v1163_v59, %v1155_v58  ;;  %v1153_v4 = vsub.f32 %v1141_v1, %v5175_v49  ;;  %v1161_v5 = vadd.f32 %v5175_v49, %v1141_v1  ;;  %v3911_v57 = vpack.c.bf16 %v1599_v56, %v1598_v55  ;;  %v1584_v58 = vld [vmem:[%s5796_s14] sm:$0xff]  ;;  %v1585_v59 = vld [vmem:[%s5796_s14 + $0x8] sm:$0xff] }
 0x2eb   : > { %v1158_v6 = vmax.f32 %v1154_v63, 0.0  ;;  %v1166_v7 = vmin.f32 %v1162_v0, 0.0  ;;  %v1172_v8 = vmul.f32 %v1168_v62, %v951_v61  ;;  %v1906_v55 = vld [vmem:[#allocation17] sm:$0xff] }
 0x2ec   : > { %v1157_v10 = vmax.f32 %v1153_v4, 0.0  ;;  %v1165_v11 = vmin.f32 %v1161_v5, 0.0  ;;  %v1171_v12 = vmul.f32 %v1167_v3, %v950_v2  ;;  %v3881_v5 = vpack.c.bf16 %v1585_v59, %v1584_v58  ;;  %v1923_v56 = vld [vmem:[%s5797_s2] sm:$0xff]  ;;  %v1909_v58 = vld [vmem:[%s5798_s12 + $0x8] sm:$0xff] }
 0x2ed   : > { %v1170_v13 = vadd.f32 %v1166_v7, %v1158_v6 }
 0x2ee   : > { %v1169_v15 = vadd.f32 %v1165_v11, %v1157_v10  ;;  %v5185_v16 = vpack.c.bf16 %v1172_v8, %v1171_v12  ;;  %v1586_v8 = vld [vmem:[%s5796_s14 + $0x10] sm:$0xff] }
 0x2ef   : > { %v1174_v17 = vmul.f32 %v1170_v13, %v953_v9  ;;  %v1587_v9 = vld [vmem:[%s5796_s14 + $0x18] sm:$0xff]  ;;  %v1271_v13 = vld [vmem:[#allocation11 + $0x8] sm:$0xff] }
 0x2f0   : > { %v1173_v18 = vmul.f32 %v1169_v15, %v952_v14  ;;  %v1581_v15 = vld [vmem:[%s5794_s9 + $0x8] sm:$0xff]  ;;  %s5803_s9 = sld [smem:[#allocation41_spill]] }
 0x2f2   : > { %v5187_v19 = vpack.c.bf16 %v1174_v17, %v1173_v18  ;;  %v1270_v18 = vld [vmem:[#allocation11] sm:$0xff] }
 0x2f4   : > { %v3484_v22 = vpop.f32.mrb[8].mxu0 }
 0x2f5   : > { %v1241_v23 = vpop.f32.mrb[9].mxu0 }
 0x2f6   : > { %v3833_v25 = vpack.c.bf16 %v3484_v22, %v1241_v23  ;;  %v3885_v22 = vpack.c.bf16 %v1587_v9, %v1586_v8  ;;  %v1588_v23 = vld [vmem:[%s5796_s14 + $0x20] sm:$0xff]  ;;  %v1911_v8 = vld [vmem:[%s5798_s12 + $0x18] sm:$0xff] }
 0x2f8   : > { %3835 = vmatprep.subr.msk.bf16.mxu0 %vm5196_vm7, %v3833_v25 }
 0x2f9   : > { %3838 = vmatpush3.bf16.msk.msra.mxu0 %vm5196_vm7, %v3833_v25  ;;  %v1589_v25 = vld [vmem:[%s5796_s14 + $0x28] sm:$0xff] }
 0x2fa   : > { %3858 = vmatprep.subr.bf16.mxu0 %v3857_v26 }
 0x2fc   : > { %3490 = vmatmul.mubr.msk.f32.vlgmr.msra.gmra.mrb[10].mxu0 %vm1274_vm2, %v1251_v29  ;;  %v3889_v29 = vpack.c.bf16 %v1589_v25, %v1588_v23 }
 0x2fd   : > { %3860 = vmatpush3.bf16.msra.mxu0 %v3857_v26  ;;  %3492 = vmatprep.mubr.msk.f32.mxu0 %vm1274_vm2, %v1252_v31  ;;  %v1590_v31 = vld [vmem:[%s5796_s14 + $0x30] sm:$0xff]  ;;  %s3238_s14 = sshll.u32 %s4745_s30, 8  ;;  %s4583_s30 = smov [#allocation18]  }
 0x2fe   : > { %3862 = vmatprep.subr.bf16.mxu0 %v3861_v30  ;;  %v3893_v33 = vpack.c.bf16 %v1591_v32, %v1590_v31  ;;  %v1603_v31 = vld [vmem:[#allocation15 + $0x18] sm:$0x3f]  ;;  %s5624_s11 = scalar_lea.hbm %s5807_s25, %s3238_s14 }
 0x300   : > { %3493 = vmatmul.mubr.msk.f32.gmra.mrb[12].mxu0 %vm1274_vm2, %v1253_v34 }
 0x301   : > { %3864 = vmatpush3.bf16.msra.mxu0 %v3861_v30 }
 0x302   : > { %3866 = vmatprep.subr.bf16.mxu0 %v3865_v35 }
 0x305   : > { %3868 = vmatpush3.bf16.msra.mxu0 %v3865_v35 }
 0x306   : > { %3871 = vmatprep.subr.msk.bf16.mxu0 %vm5167_vm5, %v3869_v38 }
 0x309   : > { %3874 = vmatpush3.bf16.msk.msra.mxu0 %vm5167_vm5, %v3869_v38 }
 0x3cf   : > { %v3491_v39 = vpop.f32.mrb[10].mxu0 }
 0x3d0   : > { %v1357_v40 = vpop.f32.mrb[11].mxu0 }
 0x3d1   : > { %3511 = vmatprep.mubr.msk.f32.mxu1 %vm1376_vm8, %v1357_v40  ;;  %3533 = vmatprep.mubr.msk.f32.mxu0 %vm1376_vm8, %v1357_v40 }
 0x3d2   : > { %3512 = vmatmul.mubr.msk.f32.vlgmr.msra.gmra.mrb[0].mxu1 %vm1376_vm8, %v3491_v39  ;;  %3534 = vmatmul.mubr.msk.f32.vlgmr.msra.gmra.mrb[14].mxu0 %vm1376_vm8, %v3491_v39 }
 0x3d3   : > { %v3494_v41 = vpop.f32.mrb[12].mxu0  ;;  %3540 = vmatprep.mubr.msk.f32.mxu0 %vm1274_vm2, %v1580_v43  ;;  %3902 = vmatpush3.bf16.msra.mxu1 %v3899_v46 }
 0x3d4   : > { %v1367_v42 = vpop.f32.mrb[13].mxu0  ;;  %3904 = vmatprep.subr.bf16.mxu1 %v3903_v51 }
 0x3d5   : > { %3514 = vmatprep.mubr.msk.f32.mxu1 %vm1376_vm8, %v1367_v42 }
 0x3d6   : > { %3515 = vmatmul.mubr.msk.f32.gmra.mrb[2].mxu1 %vm1376_vm8, %v3494_v41 }
 0x3d7   : > { %3906 = vmatpush3.bf16.msra.mxu1 %v3903_v51 }
 0x3d8   : > { %3908 = vmatprep.subr.bf16.mxu1 %v3907_v54 }
 0x3db   : > { %3910 = vmatpush3.bf16.msra.mxu1 %v3907_v54 }
 0x3dc   : > { %3913 = vmatprep.subr.msk.bf16.mxu1 %vm5167_vm5, %v3911_v57 }
 0x3df   : > { %3916 = vmatpush3.bf16.msk.msra.mxu1 %vm5167_vm5, %v3911_v57  ;;  %v1908_v57 = vld [vmem:[%s5798_s12] sm:$0xff] }
 0x4a5   : > { %v3513_v60 = vpop.f32.mrb[0].mxu1  ;;  %v3535_v61 = vpop.f32.mrb[14].mxu0 }
 0x4a6   : > { %v1479_v62 = vsub.f32 %v3513_v60, %v5175_v49  ;;  %v1487_v63 = vadd.f32 %v3513_v60, %v5175_v49  ;;  %v1459_v0 = vpop.f32.mrb[1].mxu1  ;;  %v1571_v1 = vpop.f32.mrb[15].mxu0 }
 0x4a7   : > { %v1478_v2 = vsub.f32 %v1459_v0, %v5175_v49  ;;  %v1486_v3 = vadd.f32 %v1459_v0, %v5175_v49  ;;  %v3875_v4 = vpack.c.bf16 %v3535_v61, %v1571_v1 }
 0x4a8   : > { %v1483_v6 = vmax.f32 %v1479_v62, 0.0  ;;  %v1491_v7 = vmin.f32 %v1487_v63, 0.0 }
 0x4a9   : > { %v1482_v10 = vmax.f32 %v1478_v2, 0.0  ;;  %v1490_v11 = vmin.f32 %v1486_v3, 0.0  ;;  %3877 = vmatprep.subr.msk.bf16.mxu0 %vm5196_vm7, %v3875_v4  ;;  %v3516_v12 = vpop.f32.mrb[2].mxu1 }
 0x4aa   : > { %v1495_v14 = vadd.f32 %v1491_v7, %v1483_v6  ;;  %3880 = vmatpush3.bf16.msk.msra.mxu0 %vm5196_vm7, %v3875_v4  ;;  %v1469_v17 = vpop.f32.mrb[3].mxu1  ;;  %v1481_v34 = vsub.f32 %v3516_v12, %v5175_v49  ;;  %v1489_v35 = vadd.f32 %v3516_v12, %v5175_v49  ;;  %v3933_v4 = vpack.c.bf16 %v1909_v58, %v1908_v57  ;;  %v1910_v7 = vld [vmem:[%s5798_s12 + $0x10] sm:$0xff]  ;;  %v1601_v12 = vld [vmem:[#allocation15 + $0x8] sm:$0xff] }
 0x4ab   : > { %v1494_v20 = vadd.f32 %v1490_v11, %v1482_v10  ;;  %3882 = vmatprep.subr.bf16.mxu0 %v3881_v5  ;;  %v1480_v36 = vsub.f32 %v1469_v17, %v5175_v49  ;;  %v1488_v37 = vadd.f32 %v1469_v17, %v5175_v49  ;;  %v3937_v25 = vpack.c.bf16 %v1911_v8, %v1910_v7  ;;  %v1921_v57 = vld [vmem:[%s5798_s12 + $0x68] sm:$0xff] }
 0x4ac   : > { %v1499_v26 = vmul.f32 %v1495_v14, %v1271_v13  ;;  %v1485_v38 = vmax.f32 %v1481_v34, 0.0  ;;  %v1493_v39 = vmin.f32 %v1489_v35, 0.0  ;;  %v1602_v35 = vld [vmem:[#allocation15 + $0x10] sm:$0xff]  ;;  %v1930_v7 = vld [vmem:[%s5801_s3 + $0x28] sm:$0xff] }
 0x4ad   : > { %3541 = vmatmul.mubr.msk.f32.vlgmr.msra.gmra.mrb[16].mxu0 %vm1274_vm2, %v1581_v15  ;;  %v1498_v27 = vmul.f32 %v1494_v20, %v1270_v18  ;;  %v1484_v40 = vmax.f32 %v1480_v36, 0.0  ;;  %v1492_v41 = vmin.f32 %v1488_v37, 0.0  ;;  %v1600_v18 = vld [vmem:[#allocation15] sm:$0xff]  ;;  %v1924_v20 = vld [vmem:[%s5797_s2 + $0x8] sm:$0xff] }
 0x4ae   : > { %3543 = vmatprep.mubr.msk.f32.mxu0 %vm1274_vm2, %v1582_v21  ;;  %3884 = vmatpush3.bf16.msra.mxu0 %v3881_v5  ;;  %v1497_v42 = vadd.f32 %v1493_v39, %v1485_v38 }
 0x4af   : > { %3886 = vmatprep.subr.bf16.mxu0 %v3885_v22  ;;  %v5313_v30 = vpack.c.bf16 %v1499_v26, %v1498_v27  ;;  %v1496_v43 = vadd.f32 %v1492_v41, %v1484_v40  ;;  %v1914_v40 = vld [vmem:[%s5798_s12 + $0x30] sm:$0xff]  ;;  %v1915_v41 = vld [vmem:[%s5798_s12 + $0x38] sm:$0xff] }
 0x4b0   : > { %v1501_v46 = vmul.f32 %v1497_v42, %v1273_v44 }
 0x4b1   : > { %3544 = vmatmul.mubr.msk.f32.gmra.mrb[18].mxu0 %vm1274_vm2, %v1583_v28  ;;  %v1500_v48 = vmul.f32 %v1496_v43, %v1272_v45  ;;  %v3945_v45 = vpack.c.bf16 %v1915_v41, %v1914_v40  ;;  %v2288_v40 = vld [vmem:[%s5803_s9] sm:$0xff]  ;;  %v2289_v41 = vld [vmem:[%s5803_s9 + $0x8] sm:$0xff]  ;;  %v2632_v43 = vld [vmem:[%s5804_s13 + $0x38] sm:$0xff] }
 0x4b2   : > { %3888 = vmatpush3.bf16.msra.mxu0 %v3885_v22 }
 0x4b3   : > { %3890 = vmatprep.subr.bf16.mxu0 %v3889_v29  ;;  %v5330_v50 = vpack.c.bf16 %v1501_v46, %v1500_v48  ;;  %v1916_v46 = vld [vmem:[%s5798_s12 + $0x40] sm:$0xff]  ;;  %v1917_v48 = vld [vmem:[%s5798_s12 + $0x48] sm:$0xff] }
 0x4b6   : > { %3892 = vmatpush3.bf16.msra.mxu0 %v3889_v29  ;;  %v1913_v29 = vld [vmem:[%s5798_s12 + $0x28] sm:$0xff] }
 0x4b7   : > { %3895 = vmatprep.subr.msk.bf16.mxu0 %vm5167_vm5, %v3893_v33  ;;  %v3941_v38 = vpack.c.bf16 %v1913_v29, %v1912_v24  ;;  %v2278_v24 = vld [vmem:[%s5802_s17 + $0x38] sm:$0xff] }
 0x4ba   : > { %3898 = vmatpush3.bf16.msk.msra.mxu0 %vm5167_vm5, %v3893_v33 }
 0x580   : > { %v3542_v51 = vpop.f32.mrb[16].mxu0 }
 0x581   : > { %v1685_v52 = vpop.f32.mrb[17].mxu0 }
 0x582   : > { %3562 = vmatprep.mubr.msk.f32.mxu0 %vm1376_vm8, %v1685_v52  ;;  %3584 = vmatprep.mubr.msk.f32.mxu1 %vm1376_vm8, %v1685_v52  ;;  %v3949_v52 = vpack.c.bf16 %v1917_v48, %v1916_v46  ;;  %v2290_v46 = vld [vmem:[%s5803_s9 + $0x10] sm:$0xff]  ;;  %v2291_v48 = vld [vmem:[%s5803_s9 + $0x18] sm:$0xff] }
 0x583   : > { %3563 = vmatmul.mubr.msk.f32.vlgmr.msra.gmra.mrb[20].mxu0 %vm1376_vm8, %v3542_v51  ;;  %3585 = vmatmul.mubr.msk.f32.vlgmr.msra.gmra.mrb[4].mxu1 %vm1376_vm8, %v3542_v51  ;;  %v1907_v51 = vld [vmem:[#allocation17 + $0x8] sm:$0xff] }
 0x584   : > { %v3545_v53 = vpop.f32.mrb[18].mxu0  ;;  %3591 = vmatprep.mubr.msk.f32.mxu1 %vm1274_vm2, %v1923_v56  ;;  %v1920_v56 = vld [vmem:[%s5798_s12 + $0x60] sm:$0xff] }
 0x585   : > { %v1695_v54 = vpop.f32.mrb[19].mxu0  ;;  %v3957_v58 = vpack.c.bf16 %v1921_v57, %v1920_v56  ;;  %v2294_v57 = vld [vmem:[%s5803_s9 + $0x30] sm:$0xff] }
 0x586   : > { %3565 = vmatprep.mubr.msk.f32.mxu0 %vm1376_vm8, %v1695_v54  ;;  %v1919_v54 = vld [vmem:[%s5798_s12 + $0x58] sm:$0xff] }
 0x587   : > { %3566 = vmatmul.mubr.msk.f32.gmra.mrb[22].mxu0 %vm1376_vm8, %v3545_v53  ;;  %v1918_v53 = vld [vmem:[%s5798_s12 + $0x50] sm:$0xff] }
 0x588   : > { %3602 = vmatprep.mubr.msk.f32.mxu0 %vm2017_vm9, %v1906_v55  ;;  %v3953_v55 = vpack.c.bf16 %v1919_v54, %v1918_v53  ;;  %v4025_v53 = vpack.c.bf16 %v2291_v48, %v2290_v46  ;;  %v2292_v54 = vld [vmem:[%s5803_s9 + $0x20] sm:$0xff] }
 0x656   : > { %v3564_v59 = vpop.f32.mrb[20].mxu0  ;;  %v3586_v60 = vpop.f32.mrb[4].mxu1 }
 0x657   : > { %v1805_v61 = vsub.f32 %v3564_v59, %v5175_v49  ;;  %v1813_v62 = vadd.f32 %v3564_v59, %v5175_v49  ;;  %v1785_v63 = vpop.f32.mrb[21].mxu0  ;;  %v1897_v0 = vpop.f32.mrb[5].mxu1  ;;  %v1922_v59 = vld [vmem:[%s5798_s12 + $0x70] sm:$0xff] }
 0x658   : > { %v1804_v1 = vsub.f32 %v1785_v63, %v5175_v49  ;;  %v1812_v2 = vadd.f32 %v1785_v63, %v5175_v49  ;;  %v3917_v3 = vpack.c.bf16 %v3586_v60, %v1897_v0  ;;  %v1925_v60 = vld [vmem:[%s5801_s3] sm:$0xff] }
 0x659   : > { %v1809_v5 = vmax.f32 %v1805_v61, 0.0  ;;  %v1817_v6 = vmin.f32 %v1813_v62, 0.0  ;;  %v1926_v61 = vld [vmem:[%s5801_s3 + $0x8] sm:$0xff] }
 0x65a   : > { %v1808_v9 = vmax.f32 %v1804_v1, 0.0  ;;  %v1816_v10 = vmin.f32 %v1812_v2, 0.0  ;;  %v3567_v11 = vpop.f32.mrb[22].mxu0  ;;  %3919 = vmatprep.subr.msk.bf16.mxu1 %vm5196_vm7, %v3917_v3  ;;  %v3961_v62 = vpack.c.bf16 %v1926_v61, %v1925_v60  ;;  %v1927_v1 = vld [vmem:[%s5801_s3 + $0x10] sm:$0xff]  ;;  %v1928_v2 = vld [vmem:[%s5801_s3 + $0x18] sm:$0xff] }
 0x65b   : > { %v1821_v13 = vadd.f32 %v1817_v6, %v1809_v5  ;;  %v1807_v14 = vsub.f32 %v3567_v11, %v5175_v49  ;;  %v1815_v15 = vadd.f32 %v3567_v11, %v5175_v49  ;;  %v1795_v17 = vpop.f32.mrb[23].mxu0  ;;  %3922 = vmatpush3.bf16.msk.msra.mxu1 %vm5196_vm7, %v3917_v3  ;;  %v3965_v5 = vpack.c.bf16 %v1928_v2, %v1927_v1  ;;  %v1929_v6 = vld [vmem:[%s5801_s3 + $0x20] sm:$0xff]  ;;  %v2640_v60 = vld [vmem:[#allocation9] sm:$0xff] }
 0x65c   : > { %v1820_v21 = vadd.f32 %v1816_v10, %v1808_v9  ;;  %v1806_v22 = vsub.f32 %v1795_v17, %v5175_v49  ;;  %v1814_v23 = vadd.f32 %v1795_v17, %v5175_v49  ;;  %3934 = vmatprep.subr.bf16.mxu1 %v3933_v4  ;;  %v3969_v8 = vpack.c.bf16 %v1930_v7, %v1929_v6  ;;  %v1931_v9 = vld [vmem:[%s5801_s3 + $0x30] sm:$0xff]  ;;  %v1932_v10 = vld [vmem:[%s5801_s3 + $0x38] sm:$0xf]  ;;  %v2623_v1 = vld [vmem:[#allocation8] sm:$0xff]  ;;  %s926_s3 = scalar_lea.vmem [#allocation18], %s5806_s0  ;;  %s4491_s0 = sshll.u32 %s4583_s30, 4  ;;  %s4492_s0 = int_to_ptr.vmem [resolvable:$false] %s4491_s0 }
 0x65d   : > { %v1811_v26 = vmax.f32 %v1807_v14, 0.0  ;;  %v1819_v27 = vmin.f32 %v1815_v15, 0.0  ;;  %v1825_v28 = vmul.f32 %v1821_v13, %v1601_v12  ;;  %v3973_v11 = vpack.c.bf16 %v1932_v10, %v1931_v9  ;;  %v2286_v12 = vld [vmem:[#allocation14] sm:$0xff]  ;;  %v2287_v17 = vld [vmem:[#allocation14 + $0x8] sm:$0xff]  ;;  %v2625_v2 = vld [vmem:[%s5804_s13] sm:$0xff]  ;;  %s4493_s2 = scalar_lea.vmem %s4492_s0, 512 }
 0x65e   : > { %v1810_v32 = vmax.f32 %v1806_v22, 0.0  ;;  %v1818_v33 = vmin.f32 %v1814_v23, 0.0  ;;  %v1824_v34 = vmul.f32 %v1820_v21, %v1600_v18  ;;  %3592 = vmatmul.mubr.msk.f32.vlgmr.msra.gmra.mrb[6].mxu1 %vm1274_vm2, %v1924_v20  ;;  %v2269_v18 = vld [vmem:[#allocation12] sm:$0xff]  ;;  %v2273_v22 = vld [vmem:[%s5802_s17 + $0x10] sm:$0xff]  ;;  %v2274_v23 = vld [vmem:[%s5802_s17 + $0x18] sm:$0xff] }
 0x65f   : > { %v1823_v49 = vadd.f32 %v1819_v27, %v1811_v26  ;;  %3936 = vmatpush3.bf16.msra.mxu1 %v3933_v4  ;;  %v2271_v20 = vld [vmem:[%s5802_s17] sm:$0xff]  ;;  %v2276_v27 = vld [vmem:[%s5802_s17 + $0x28] sm:$0xff]  ;;  %v2628_v6 = vld [vmem:[%s5804_s13 + $0x18] sm:$0xff] }
 0x660   : > { %v1822_v36 = vadd.f32 %v1818_v33, %v1810_v32  ;;  %v3923_v37 = vpack.c.bf16 %v1825_v28, %v1824_v34  ;;  %3938 = vmatprep.subr.bf16.mxu1 %v3937_v25  ;;  %v3993_v21 = vpack.c.bf16 %v2272_v47, %v2271_v20  ;;  %v2275_v26 = vld [vmem:[%s5802_s17 + $0x20] sm:$0xff]  ;;  %v2280_v32 = vld [vmem:[%s5802_s17 + $0x48] sm:$0xff]  ;;  %v2281_v34 = vld [vmem:[%s5802_s17 + $0x50] sm:$0xff] }
 0x661   : > { %v1827_v39 = vmul.f32 %v1823_v49, %v1603_v31  ;;  %v4001_v28 = vpack.c.bf16 %v2276_v27, %v2275_v26  ;;  %v2279_v31 = vld [vmem:[%s5802_s17 + $0x40] sm:$0xff]  ;;  %v2282_v49 = vld [vmem:[%s5802_s17 + $0x58] sm:$0xff]  ;;  %v2630_v9 = vld [vmem:[%s5804_s13 + $0x28] sm:$0xff] }
 0x662   : > { %v1826_v42 = vmul.f32 %v1822_v36, %v1602_v35  ;;  %3924 = vmatprep.subr.bf16.mxu0 %v3923_v37  ;;  %v4009_v33 = vpack.c.bf16 %v2280_v32, %v2279_v31  ;;  %v4013_v35 = vpack.c.bf16 %v2282_v49, %v2281_v34  ;;  %v2283_v36 = vld [vmem:[%s5802_s17 + $0x60] sm:$0xff]  ;;  %v2638_v47 = vld [vmem:[%s5804_s13 + $0x68] sm:$0xff]  ;;  %v2648_v49 = vld [vmem:[%s5805_s26 + $0x30] sm:$0xff] }
 0x663   : > { %3926 = vmatpush3.bf16.msra.mxu0 %v3923_v37  ;;  %3940 = vmatpush3.bf16.msra.mxu1 %v3937_v25  ;;  %v3997_v25 = vpack.c.bf16 %v2274_v23, %v2273_v22  ;;  %v2284_v37 = vld [vmem:[%s5802_s17 + $0x68] sm:$0xff]  ;;  %v2637_v20 = vld [vmem:[%s5804_s13 + $0x60] sm:$0xff]  ;;  %v2639_v22 = vld [vmem:[%s5804_s13 + $0x70] sm:$0xff] }
 0x664   : > { %v3927_v44 = vpack.c.bf16 %v1827_v39, %v1826_v42  ;;  %3942 = vmatprep.subr.bf16.mxu1 %v3941_v38  ;;  %v2285_v39 = vld [vmem:[%s5802_s17 + $0x70] sm:$0xff]  ;;  %v4021_v42 = vpack.c.bf16 %v2289_v41, %v2288_v40  ;;  %v2642_v23 = vld [vmem:[%s5805_s26] sm:$0xff] }
 0x665   : > { %v2646_v32 = vld [vmem:[%s5805_s26 + $0x20] sm:$0xff] }
 0x666   : > { %3929 = vmatprep.subr.msk.bf16.mxu0 %vm5384_vm11, %v3927_v44 }
 0x667   : > { %3932 = vmatpush3.bf16.msk.msra.mxu0 %vm5384_vm11, %v3927_v44  ;;  %3944 = vmatpush3.bf16.msra.mxu1 %v3941_v38  ;;  %v4017_v38 = vpack.c.bf16 %v2284_v37, %v2283_v36 }
 0x668   : > { %3946 = vmatprep.subr.bf16.mxu1 %v3945_v45 }
 0x66a   : > { %3603 = vmatmul.mubr.msk.f32.vlgmr.msra.gmra.mrb[24].mxu0 %vm2017_vm9, %v1907_v51 }
 0x66b   : > { %3948 = vmatpush3.bf16.msra.mxu1 %v3945_v45  ;;  %3661 = vmatprep.mubr.msk.f32.mxu0 %vm954_vm0, %v2286_v12  ;;  %v2633_v12 = vld [vmem:[%s5804_s13 + $0x40] sm:$0xff] }
 0x66c   : > { %3950 = vmatprep.subr.bf16.mxu1 %v3949_v52 }
 0x66f   : > { %3952 = vmatpush3.bf16.msra.mxu1 %v3949_v52 }
 0x670   : > { %3954 = vmatprep.subr.bf16.mxu1 %v3953_v55 }
 0x673   : > { %3956 = vmatpush3.bf16.msra.mxu1 %v3953_v55  ;;  %v2293_v55 = vld [vmem:[%s5803_s9 + $0x28] sm:$0xff] }
 0x674   : > { %3958 = vmatprep.subr.bf16.mxu1 %v3957_v58  ;;  %v4029_v56 = vpack.c.bf16 %v2293_v55, %v2292_v54 }
 0x677   : > { %3960 = vmatpush3.bf16.msra.mxu1 %v3957_v58  ;;  %v2295_v58 = vld [vmem:[%s5803_s9 + $0x38] sm:$0xff]  ;;  %s2993_s9 = sshll.u32 %s926_s3, 4  ;;  %s5619_s9 = int_to_ptr.vmem [resolvable:$true] %s2993_s9 }
 0x678   : > { %3633 = vmatprep.subr.mxu1 %v1922_v59  ;;  %s4487_s1 = scalar_lea.vmem %s5619_s9, 256  ;;  %p4494_p2 = scmp.lt.s32.totalorder %s5619_s9, %s4492_s0 }
 0x679   : > { %p4488_p12 = scmp.ne.s32.totalorder %s5619_s9, %s4487_s1  ;;  %p4495_p8 = scmp.lt.s32.totalorder %s4493_s2, %s4487_s1 }
 0x67b   : > { %3634 = vmatpush3.msra.mxu1 %v1922_v59  ;;  %v4033_v59 = vpack.c.bf16 %v2295_v58, %v2294_v57  ;;  %p4489_p13 = pnand %p4488_p12, %p5808_p1  ;;  %p4496_p4 = por %p4495_p8, %p4494_p2 }
 0x67c   : > { %3962 = vmatprep.subr.bf16.mxu1 %v3961_v62 }
 0x67d   : > { %p4490_p0 = pneg %p4489_p13 }
 0x67f   : > { %p4497_p10 = pnand %p4496_p4, %p4490_p0 }
 0x731   : > { %v3593_v63 = vpop.f32.mrb[6].mxu1 }
 0x732   : > { %v2008_v0 = vpop.f32.mrb[7].mxu1 }
 0x73d   : > { %v3604_v3 = vpop.f32.mrb[24].mxu0 }
 0x73e   : > { %v2094_v4 = vpop.f32.mrb[25].mxu0 }
 0x73f   : > { %3635 = vmatprep.mubr.msk.f32.mxu1 %vm2103_vm12, %v2094_v4 }
 0x740   : > { %3636 = vmatmul.mubr.msk.f32.vlgmr.msra.gmra.mrb[8].mxu1 %vm2103_vm12, %v3604_v3  ;;  %v2626_v3 = vld [vmem:[%s5804_s13 + $0x8] sm:$0xff] }
 0x741   : > { %3964 = vmatpush3.bf16.msra.mxu1 %v3961_v62  ;;  %3654 = vmatprep.mubr.msk.f32.mxu1 %vm1376_vm8, %v2008_v0  ;;  %v2641_v0 = vld [vmem:[#allocation9 + $0x8] sm:$0xff]  ;;  %v4051_v4 = vpack.c.bf16 %v2626_v3, %v2625_v2 }
 0x742   : > { %3966 = vmatprep.subr.bf16.mxu1 %v3965_v5 }
 0x745   : > { %3968 = vmatpush3.bf16.msra.mxu1 %v3965_v5  ;;  %v2627_v5 = vld [vmem:[%s5804_s13 + $0x10] sm:$0xff] }
 0x746   : > { %3970 = vmatprep.subr.bf16.mxu1 %v3969_v8  ;;  %v4055_v7 = vpack.c.bf16 %v2628_v6, %v2627_v5 }
 0x749   : > { %3972 = vmatpush3.bf16.msra.mxu1 %v3969_v8  ;;  %v2629_v8 = vld [vmem:[%s5804_s13 + $0x20] sm:$0xff] }
 0x74a   : > { %3975 = vmatprep.subr.msk.bf16.mxu1 %vm5167_vm5, %v3973_v11  ;;  %v4059_v10 = vpack.c.bf16 %v2630_v9, %v2629_v8 }
 0x74d   : > { %3978 = vmatpush3.bf16.msk.msra.mxu1 %vm5167_vm5, %v3973_v11 }
 0x750   : > { %3655 = vmatmul.mubr.msk.f32.vlgmr.msra.gmra.mrb[8].mxu1 %vm1376_vm8, %v3593_v63 }
 0x751   : > { %3731 = vmatprep.mubr.msk.f32.mxu1 %vm954_vm0, %v2640_v60 }
 0x823   : > { %v3656_v13 = vpop.f32.mrb[8].mxu1 }
 0x824   : > { %v2260_v14 = vpop.f32.mrb[9].mxu1 }
 0x825   : > { %v3979_v15 = vpack.c.bf16 %v3656_v13, %v2260_v14  ;;  %v2634_v13 = vld [vmem:[%s5804_s13 + $0x48] sm:$0xff] }
 0x826   : > { %v4067_v14 = vpack.c.bf16 %v2634_v13, %v2633_v12 }
 0x827   : > { %3980 = vmatprep.subr.bf16.mxu0 %v3979_v15 }
 0x828   : > { %3982 = vmatpush3.bf16.msra.mxu0 %v3979_v15  ;;  %v2635_v15 = vld [vmem:[%s5804_s13 + $0x50] sm:$0xff] }
 0x829   : > { %3984 = vmatprep.subr.bf16.mxu0 %v5313_v30 }
 0x82b   : > { %3662 = vmatmul.mubr.msk.f32.vlgmr.msra.gmra.mrb[26].mxu0 %vm954_vm0, %v2287_v17  ;;  %v2636_v17 = vld [vmem:[%s5804_s13 + $0x58] sm:$0xff] }
 0x82c   : > { %3986 = vmatpush3.bf16.msra.mxu0 %v5313_v30  ;;  %3672 = vmatprep.mubr.msk.f32.mxu0 %vm2017_vm9, %v2269_v18  ;;  %v2270_v30 = vld [vmem:[#allocation12 + $0x8] sm:$0xff]  ;;  %v4071_v18 = vpack.c.bf16 %v2636_v17, %v2635_v15 }
 0x82d   : > { %3989 = vmatprep.subr.msk.bf16.mxu0 %vm5384_vm11, %v5330_v50 }
 0x830   : > { %3992 = vmatpush3.bf16.msk.msra.mxu0 %vm5384_vm11, %v5330_v50  ;;  %v2277_v50 = vld [vmem:[%s5802_s17 + $0x30] sm:$0xff] }
 0x831   : > { %3994 = vmatprep.subr.bf16.mxu0 %v3993_v21  ;;  %v4005_v29 = vpack.c.bf16 %v2278_v24, %v2277_v50  ;;  %v2645_v50 = vld [vmem:[%s5805_s26 + $0x18] sm:$0xff] }
 0x833   : > { %3673 = vmatmul.mubr.msk.f32.vlgmr.msra.gmra.mrb[28].mxu0 %vm2017_vm9, %v2270_v30  ;;  %v2643_v30 = vld [vmem:[%s5805_s26 + $0x8] sm:$0xff] }
 0x834   : > { %3996 = vmatpush3.bf16.msra.mxu0 %v3993_v21  ;;  %v4075_v21 = vpack.c.bf16 %v2638_v47, %v2637_v20 }
 0x835   : > { %3998 = vmatprep.subr.bf16.mxu0 %v3997_v25 }
 0x838   : > { %4000 = vmatpush3.bf16.msra.mxu0 %v3997_v25  ;;  %v4079_v25 = vpack.c.bf16 %v2643_v30, %v2642_v23 }
 0x839   : > { %4002 = vmatprep.subr.bf16.mxu0 %v4001_v28 }
 0x83c   : > { %4004 = vmatpush3.bf16.msra.mxu0 %v4001_v28  ;;  %v2644_v28 = vld [vmem:[%s5805_s26 + $0x10] sm:$0xff] }
 0x83d   : > { %4006 = vmatprep.subr.bf16.mxu0 %v4005_v29  ;;  %v4083_v31 = vpack.c.bf16 %v2645_v50, %v2644_v28 }
 0x840   : > { %4008 = vmatpush3.bf16.msra.mxu0 %v4005_v29 }
 0x841   : > { %4010 = vmatprep.subr.bf16.mxu0 %v4009_v33 }
 0x844   : > { %4012 = vmatpush3.bf16.msra.mxu0 %v4009_v33  ;;  %v2647_v33 = vld [vmem:[%s5805_s26 + $0x28] sm:$0xff] }
 0x845   : > { %4014 = vmatprep.subr.bf16.mxu0 %v4013_v35  ;;  %v4087_v34 = vpack.c.bf16 %v2647_v33, %v2646_v32 }
 0x848   : > { %4016 = vmatpush3.bf16.msra.mxu0 %v4013_v35  ;;  %v2649_v35 = vld [vmem:[%s5805_s26 + $0x38] sm:$0xff] }
 0x849   : > { %4018 = vmatprep.subr.bf16.mxu0 %v4017_v38  ;;  %v4091_v36 = vpack.c.bf16 %v2649_v35, %v2648_v49 }
 0x84c   : > { %4020 = vmatpush3.bf16.msra.mxu0 %v4017_v38 }
 0x84d   : > { %3703 = vmatprep.subr.mxu0 %v2285_v39 }
 0x850   : > { %3704 = vmatpush3.msra.mxu0 %v2285_v39 }
 0x851   : > { %4022 = vmatprep.subr.bf16.mxu0 %v4021_v42 }
 0x8fe   : > { %v3663_v44 = vpop.f32.mrb[26].mxu0 }
 0x8ff   : > { %v2368_v45 = vpop.f32.mrb[27].mxu0 }
 0x906   : > { %v3674_v51 = vpop.f32.mrb[28].mxu0 }
 0x907   : > { %v2452_v52 = vpop.f32.mrb[29].mxu0 }
 0x908   : > { %3705 = vmatprep.mubr.msk.f32.mxu0 %vm2103_vm12, %v2452_v52 }
 0x909   : > { %3706 = vmatmul.mubr.msk.f32.vlgmr.msra.gmra.mrb[30].mxu0 %vm2103_vm12, %v3674_v51 }
 0x90a   : > { %4024 = vmatpush3.bf16.msra.mxu0 %v4021_v42  ;;  %3724 = vmatprep.mubr.msk.f32.mxu0 %vm1052_vm1, %v2368_v45 }
 0x90b   : > { %4026 = vmatprep.subr.bf16.mxu0 %v4025_v53 }
 0x90e   : > { %4028 = vmatpush3.bf16.msra.mxu0 %v4025_v53 }
 0x90f   : > { %4030 = vmatprep.subr.bf16.mxu0 %v4029_v56 }
 0x912   : > { %4032 = vmatpush3.bf16.msra.mxu0 %v4029_v56 }
 0x913   : > { %4034 = vmatprep.subr.bf16.mxu0 %v4033_v59 }
 0x916   : > { %4036 = vmatpush3.bf16.msra.mxu0 %v4033_v59 }
 0x919   : > { %3725 = vmatmul.mubr.msk.f32.vlgmr.msra.gmra.mrb[30].mxu0 %vm1052_vm1, %v3663_v44 }
 0x9ec   : > { %v3726_v61 = vpop.f32.mrb[30].mxu0 }
 0x9ed   : > { %v2614_v62 = vpop.f32.mrb[31].mxu0 }
 0x9ee   : > { %v4037_v63 = vpack.c.bf16 %v3726_v61, %v2614_v62 }
 0x9f0   : > { %4038 = vmatprep.subr.bf16.mxu1 %v4037_v63 }
 0x9f1   : > { %4040 = vmatpush3.bf16.msra.mxu1 %v4037_v63 }
 0x9f2   : > { %4042 = vmatprep.subr.bf16.mxu1 %v5185_v16 }
 0x9f4   : > { %3732 = vmatmul.mubr.msk.f32.vlgmr.msra.gmra.mrb[10].mxu1 %vm954_vm0, %v2641_v0 }
 0x9f5   : > { %4044 = vmatpush3.bf16.msra.mxu1 %v5185_v16  ;;  %3742 = vmatprep.mubr.msk.f32.mxu1 %vm2017_vm9, %v2623_v1  ;;  %v2624_v16 = vld [vmem:[#allocation8 + $0x8] sm:$0xff] }
 0x9f6   : > { %4047 = vmatprep.subr.msk.bf16.mxu1 %vm5384_vm11, %v5187_v19 }
 0x9f9   : > { %4050 = vmatpush3.bf16.msk.msra.mxu1 %vm5384_vm11, %v5187_v19  ;;  %v2631_v19 = vld [vmem:[%s5804_s13 + $0x30] sm:$0xff] }
 0x9fa   : > { %4052 = vmatprep.subr.bf16.mxu1 %v4051_v4  ;;  %v4063_v11 = vpack.c.bf16 %v2632_v43, %v2631_v19 }
 0x9fc   : > { %3743 = vmatmul.mubr.msk.f32.vlgmr.msra.gmra.mrb[12].mxu1 %vm2017_vm9, %v2624_v16 }
 0x9fd   : > { %4054 = vmatpush3.bf16.msra.mxu1 %v4051_v4 }
 0x9fe   : > { %4056 = vmatprep.subr.bf16.mxu1 %v4055_v7 }
 0xa01   : > { %4058 = vmatpush3.bf16.msra.mxu1 %v4055_v7 }
 0xa02   : > { %4060 = vmatprep.subr.bf16.mxu1 %v4059_v10 }
 0xa05   : > { %4062 = vmatpush3.bf16.msra.mxu1 %v4059_v10 }
 0xa06   : > { %4064 = vmatprep.subr.bf16.mxu1 %v4063_v11 }
 0xa09   : > { %4066 = vmatpush3.bf16.msra.mxu1 %v4063_v11 }
 0xa0a   : > { %4068 = vmatprep.subr.bf16.mxu1 %v4067_v14 }
 0xa0d   : > { %4070 = vmatpush3.bf16.msra.mxu1 %v4067_v14 }
 0xa0e   : > { %4072 = vmatprep.subr.bf16.mxu1 %v4071_v18 }
 0xa11   : > { %4074 = vmatpush3.bf16.msra.mxu1 %v4071_v18 }
 0xa12   : > { %4076 = vmatprep.subr.bf16.mxu1 %v4075_v21 }
 0xa15   : > { %4078 = vmatpush3.bf16.msra.mxu1 %v4075_v21 }
 0xa16   : > { %3773 = vmatprep.subr.mxu1 %v2639_v22 }
 0xa19   : > { %3774 = vmatpush3.msra.mxu1 %v2639_v22 }
 0xa1a   : > { %4080 = vmatprep.subr.bf16.mxu1 %v4079_v25 }
 0xac7   : > { %v3733_v26 = vpop.f32.mrb[10].mxu1 }
 0xac8   : > { %v2722_v27 = vpop.f32.mrb[11].mxu1 }
 0xacf   : > { %v3744_v24 = vpop.f32.mrb[12].mxu1 }
 0xad0   : > { %v2806_v29 = vpop.f32.mrb[13].mxu1 }
 0xad1   : > { %3775 = vmatprep.mubr.msk.f32.mxu1 %vm2103_vm12, %v2806_v29 }
 0xad2   : > { %3776 = vmatmul.mubr.msk.f32.vlgmr.msra.gmra.mrb[14].mxu1 %vm2103_vm12, %v3744_v24 }
 0xad3   : > { %4082 = vmatpush3.bf16.msra.mxu1 %v4079_v25  ;;  %3794 = vmatprep.mubr.msk.f32.mxu1 %vm1052_vm1, %v2722_v27 }
 0xad4   : > { %4084 = vmatprep.subr.bf16.mxu1 %v4083_v31 }
 0xad7   : > { %4086 = vmatpush3.bf16.msra.mxu1 %v4083_v31 }
 0xad8   : > { %4088 = vmatprep.subr.bf16.mxu1 %v4087_v34 }
 0xadb   : > { %4090 = vmatpush3.bf16.msra.mxu1 %v4087_v34 }
 0xadc   : > { %4092 = vmatprep.subr.bf16.mxu1 %v4091_v36 }
 0xadf   : > { %4094 = vmatpush3.bf16.msra.mxu1 %v4091_v36 }
 0xae2   : > { %3795 = vmatmul.mubr.msk.f32.vlgmr.msra.gmra.mrb[14].mxu1 %vm1052_vm1, %v3733_v26 }
 0xbb5   : > { %v3796_v37 = vpop.f32.mrb[14].mxu1 }
 0xbb6   : > { %2978 = vst.msk [vmem:[%s926_s3 + $0x8] sm:$0xff] %vm1052_vm1, %v3796_v37  ;;  %v2968_v38 = vpop.f32.mrb[15].mxu1 }
 0xbb7   : > { %2977 = vst.msk [vmem:[%s926_s3] sm:$0xff] %vm1052_vm1, %v2968_v38 }
 0xbb8   : > { %4500 = shalt.err (!%p4497_p10)
}
 0xbb9   : > { %s4501_s3 = scalar_lea.hbm %s5624_s11, 256  ;;  %s4505_s30 = scalar_lea.hbm %s5807_s25, 512 }
 0xbba   : > { %p4502_p11 = scmp.ne.s32.totalorder %s5624_s11, %s4501_s3  ;;  %p4506_p7 = scmp.lt.u32.totalorder %s5624_s11, %s5807_s25 }
 0xbbb   : > { %p4507_p6 = scmp.lt.u32.totalorder %s4505_s30, %s4501_s3  ;;  %p4509_p12 = scmp.lt.u32.totalorder %s4501_s3, %s5624_s11 }
 0xbbc   : > { %p4503_p3 = pnand %p4502_p11, %p5808_p1 }
 0xbbd   : > { %p4508_p9 = por %p4507_p6, %p4506_p7 }
 0xbbe   : > { %p4504_p5 = pneg %p4503_p3 }
 0xbbf   : > { %p4510_p13 = por %p4509_p12, %p4508_p9 }
 0xbc1   : > { %p4511_p0 = pnand %p4510_p13, %p4504_p5 }
 0xbc3   : > { %4514 = shalt.err (!%p4511_p0)
}
 0xbc4   : > { %s4584_s1 = smov 128   ;;  %s4585_s2 = smov 8  }
 0xbc5   : > { %s5809_s13 = scalar_lea.sflag [#allocation5], %s5042_s6 }
 0xbc6   : > { %4135 = dma.vmem_to_hbm [thread:$0]  (%p5808_p1), %s5619_s9, 256, %s5624_s11, %s5809_s13, %s4584_s1, %s4584_s1, %s4585_s2  }
 0xbc7 PF: > { %s3008_s7 = sand.u32 1, %s4557_s28   ;;  %p5810_p2 = scmp.ne.s32.totalorder %s5770_s10, 0 }
 0xbc8   : > { %p5811_p8 = scmp.ge.s32.totalorder %s4569_s29, 2  ;;  %s3009_s3 = scalar_lea.sflag [#allocation5], %s3008_s7 }
 0xbca   : > { %p4167_p4 = pnand %p5811_p8, %p5810_p2 }
 0xbcc   : > { %4552 = dma.done.wait (!%p4167_p4), %s3009_s3, 256  }
 0xbcd   : > { %4554 = vsyncadd (!%p4167_p4), %s3009_s3, 4294967040  ;;  %p44_p10 = scmp.ge.s32.totalorder %s4960_s5, 4   ;;  %s5812_s28 = smov %s4561_s8 }
 0xbce   : > { %s5813_s8 = smov %s4565_s4  ;;  %s5814_s4 = smov %s4971_s18 }
 0xbcf   : > { %s5815_s29 = smov %s4960_s5  ;;  %46 = sbr.rel (!%p44_p10) target bundleno = 35 (0x23), region = 201 }
 0xbd6   :  { %3014 = vsyncpa [#allocation4], 1 }
 0xbd7   :  { %3016 = vsyncpa [#allocation4 + $0x1], 1 }
 0xbd8   :  { %3017 = vsyncpa [#allocation7], 1 }
 0xbd9   :  { %3018 = vsyncpa [#allocation10], 1 }
 0xbda   :  { %3019 = vsyncpa [#allocation13], 1 }
 0xbdb   :  { %3020 = vsyncpa [#allocation16], 1 }
 0xbdc   :  { %3021 = vsyncpa [#allocation5], 1 }
 0xbdd   :  { %3023 = vsyncpa [#allocation5 + $0x1], 1 }

</bundles_post_ra>
